<compile_context>
chip_gen: v6e
topology: v6e:2x2x1
jax: 0.10.0
libtpu: 0.0.40
codegen_flags: <defaults>
</compile_context>

<pallas_src>
from functools import partial

import jax
import jax.numpy as jnp
from jax import lax
from jax.experimental import pallas as pl
from jax.experimental.pallas import tpu as pltpu

BN_EPS = 1e-5  # PyTorch BatchNorm1d default


# ---------------------------------------------------------------------------
# Sparse threshold schedule (pure Python scalar logic, mirrors torch Sparse)
# ---------------------------------------------------------------------------
class SparseSchedule:
    def __init__(self, dataset):
        self.dataset = dataset
        self.last_k = 0.0

    def get_k(self, epoch, l0_norm):
        l0_norm_threshold = 40
        start, end = 250, 500
        minimum, maximum = 0.0, 1.0
        if self.dataset == "indian_pines":
            l0_norm_threshold = 50
        if l0_norm <= l0_norm_threshold:
            return self.last_k
        if epoch < start:
            k = minimum
        elif epoch > end:
            k = maximum
        else:
            k = (epoch - start) * (maximum / (end - start))
        self.last_k = k
        return k


# ---------------------------------------------------------------------------
# Pass 1: weighter MLP -> |.| -> batch-mean accumulator -> sparse threshold
# ---------------------------------------------------------------------------
def _weighter_kernel(nrows_ref, k_ref,            # scalar prefetch (SMEM)
                     x_ref,                       # (TB, Sp) f32
                     w1_ref, b1_ref,              # (Sp, 512) bf16, (1, 512) f32
                     w2_ref, b2_ref,              # (512, Sp) bf16, (1, Sp) f32
                     chanw_ref, sparse_ref,       # (1, Sp) f32 outputs (resident)
                     acc_ref):                    # VMEM scratch (1, Sp) f32
    t = pl.program_id(0)
    tb = x_ref.shape[0]

    @pl.when(t == 0)
    def _():
        acc_ref[...] = jnp.zeros_like(acc_ref)

    x = x_ref[...]
    h = jnp.dot(x.astype(jnp.bfloat16), w1_ref[...],
                preferred_element_type=jnp.float32) + b1_ref[...]
    h = jnp.maximum(h, 0.0)
    cw = jnp.dot(h.astype(jnp.bfloat16), w2_ref[...],
                 preferred_element_type=jnp.float32) + b2_ref[...]
    cw = jnp.abs(cw)

    # mask rows that are only batch padding
    row = t * tb + lax.broadcasted_iota(jnp.int32, (tb, 1), 0)
    cw = jnp.where(row < nrows_ref[0], cw, 0.0)
    acc_ref[...] += jnp.sum(cw, axis=0, keepdims=True)

    @pl.when(t == pl.num_programs(0) - 1)
    def _():
        inv_n = 1.0 / nrows_ref[0].astype(jnp.float32)
        mean = acc_ref[...] * inv_n                      # already >= 0 (abs'd)
        chanw_ref[...] = mean
        sparse_ref[...] = jnp.where(mean < k_ref[0], 0.0, mean)


# ---------------------------------------------------------------------------
# Pass 2: h1 = relu(x @ (sw*W1) + b1); accumulate batch sum / sum-of-squares
# ---------------------------------------------------------------------------
def _h1_stats_kernel(nrows_ref,
                     x_ref, cw1s_ref, cb1_ref,
                     mu1_ref, var1_ref,
                     sum_ref, ssq_ref):
    t = pl.program_id(0)
    tb = x_ref.shape[0]

    @pl.when(t == 0)
    def _():
        sum_ref[...] = jnp.zeros_like(sum_ref)
        ssq_ref[...] = jnp.zeros_like(ssq_ref)

    h1 = jnp.dot(x_ref[...].astype(jnp.bfloat16), cw1s_ref[...],
                 preferred_element_type=jnp.float32) + cb1_ref[...]
    h1 = jnp.maximum(h1, 0.0)

    row = t * tb + lax.broadcasted_iota(jnp.int32, (tb, 1), 0)
    h1 = jnp.where(row < nrows_ref[0], h1, 0.0)
    sum_ref[...] += jnp.sum(h1, axis=0, keepdims=True)
    ssq_ref[...] += jnp.sum(h1 * h1, axis=0, keepdims=True)

    @pl.when(t == pl.num_programs(0) - 1)
    def _():
        inv_n = 1.0 / nrows_ref[0].astype(jnp.float32)
        mu = sum_ref[...] * inv_n
        var = jnp.maximum(ssq_ref[...] * inv_n - mu * mu, 0.0)
        mu1_ref[...] = mu
        var1_ref[...] = var


# ---------------------------------------------------------------------------
# Pass 3: recompute h1, h2 = relu(h1 @ W2' + b2') (BN1 folded into W2'),
#         accumulate BN2 statistics
# ---------------------------------------------------------------------------
def _h2_stats_kernel(nrows_ref,
                     x_ref, cw1s_ref, cb1_ref,
                     cw2f_ref, cb2f_ref,
                     mu2_ref, var2_ref,
                     sum_ref, ssq_ref):
    t = pl.program_id(0)
    tb = x_ref.shape[0]

    @pl.when(t == 0)
    def _():
        sum_ref[...] = jnp.zeros_like(sum_ref)
        ssq_ref[...] = jnp.zeros_like(ssq_ref)

    h1 = jnp.dot(x_ref[...].astype(jnp.bfloat16), cw1s_ref[...],
                 preferred_element_type=jnp.float32) + cb1_ref[...]
    h1 = jnp.maximum(h1, 0.0)

    h2 = jnp.dot(h1.astype(jnp.bfloat16), cw2f_ref[...],
                 preferred_element_type=jnp.float32) + cb2f_ref[...]
    h2 = jnp.maximum(h2, 0.0)

    row = t * tb + lax.broadcasted_iota(jnp.int32, (tb, 1), 0)
    h2 = jnp.where(row < nrows_ref[0], h2, 0.0)
    sum_ref[...] += jnp.sum(h2, axis=0, keepdims=True)
    ssq_ref[...] += jnp.sum(h2 * h2, axis=0, keepdims=True)

    @pl.when(t == pl.num_programs(0) - 1)
    def _():
        inv_n = 1.0 / nrows_ref[0].astype(jnp.float32)
        mu = sum_ref[...] * inv_n
        var = jnp.maximum(ssq_ref[...] * inv_n - mu * mu, 0.0)
        mu2_ref[...] = mu
        var2_ref[...] = var


# ---------------------------------------------------------------------------
# Pass 4: full classnet with BN affines folded into W2'/b2' and W3'/b3'
# ---------------------------------------------------------------------------
def _classnet_out_kernel(x_ref, cw1s_ref, cb1_ref,
                         cw2f_ref, cb2f_ref,
                         cw3f_ref, cb3f_ref, out_ref):
    h1 = jnp.dot(x_ref[...].astype(jnp.bfloat16), cw1s_ref[...],
                 preferred_element_type=jnp.float32) + cb1_ref[...]
    h1 = jnp.maximum(h1, 0.0)

    h2 = jnp.dot(h1.astype(jnp.bfloat16), cw2f_ref[...],
                 preferred_element_type=jnp.float32) + cb2f_ref[...]
    h2 = jnp.maximum(h2, 0.0)

    out_ref[...] = jnp.dot(h2.astype(jnp.bfloat16), cw3f_ref[...],
                           preferred_element_type=jnp.float32) + cb3f_ref[...]


# ---------------------------------------------------------------------------
# Wrapper
# ---------------------------------------------------------------------------
def _rup(n, m):
    return ((n + m - 1) // m) * m


def _pad2(a, rows, cols, dtype=None):
    a = jnp.asarray(a)
    out = jnp.pad(a, ((0, rows - a.shape[0]), (0, cols - a.shape[1])))
    return out.astype(dtype) if dtype is not None else out


@partial(jax.jit, static_argnames=("tile_b",))
def ann_forward(outputs, params, k, *, tile_b=256):
    """outputs: (B, shortlist) f32; params: dict of f32 arrays; k: scalar.

    Returns (channel_weights (S,), sparse_weights (S,), logits (B, C))."""
    B, S = outputs.shape
    C = params["cw3"].shape[1]

    S_pad = _rup(S, 128)
    H1 = _rup(params["w1"].shape[1], 128)     # 512
    H2 = _rup(params["cw1"].shape[1], 128)    # 300 -> 384
    H3 = _rup(params["cw2"].shape[1], 128)    # 200 -> 256
    C_pad = _rup(C, 128)

    tile_b = max(8, _rup(min(tile_b, B), 8))
    B_pad = _rup(B, tile_b)
    n_tiles = B_pad // tile_b

    f32, bf16 = jnp.float32, jnp.bfloat16

    x = _pad2(outputs.astype(f32), B_pad, S_pad)

    # Weights in bf16 (MXU-native, halves weight DMA); biases / BN params f32.
    w1 = _pad2(params["w1"], S_pad, H1, bf16)
    b1 = _pad2(params["b1"], 1, H1, f32)
    w2 = _pad2(params["w2"], H1, S_pad, bf16)
    b2 = _pad2(params["b2"], 1, S_pad, f32)
    cw1 = _pad2(params["cw1"], S_pad, H2, f32)     # scaled by sparse_w below
    cb1 = _pad2(params["cb1"], 1, H2, f32)
    g1 = _pad2(params["g1"], 1, H2, f32)
    be1 = _pad2(params["be1"], 1, H2, f32)
    cw2_f = _pad2(params["cw2"], H2, H3, f32)      # f32 copy for BN fold
    cb2 = _pad2(params["cb2"], 1, H3, f32)
    g2 = _pad2(params["g2"], 1, H3, f32)
    be2 = _pad2(params["be2"], 1, H3, f32)
    cw3_f = _pad2(params["cw3"], H3, C_pad, f32)   # f32 copy for BN fold
    cb3 = _pad2(params["cb3"], 1, C_pad, f32)

    nrows = jnp.asarray([B], jnp.int32)
    k_arr = jnp.asarray(k, jnp.float32).reshape((1,))

    def row_spec(feat):          # batch-tiled activation
        return pl.BlockSpec((tile_b, feat), lambda t, *_: (t, 0))

    def full_spec(arr):          # whole array, constant index -> VMEM resident
        return pl.BlockSpec(arr.shape, lambda t, *_: (0, 0))

    def acc_spec(feat):          # output accumulator, resident across grid
        return pl.BlockSpec((1, feat), lambda t, *_: (0, 0))

    # Explicit VMEM budget: tiles are sized so usage is well below the 32 MiB
    # scoped limit everywhere (v7x physical VMEM is only 64 MiB).
    vmem_bytes = 32 * 1024 * 1024
    cp_reduce = pltpu.CompilerParams(dimension_semantics=("arbitrary",),
                                     vmem_limit_bytes=vmem_bytes)
    cp_parallel = pltpu.CompilerParams(dimension_semantics=("parallel",),
                                       vmem_limit_bytes=vmem_bytes)

    # ---- pass 1: weighter -> channel weights mean -> sparse threshold -------
    chan_w, sparse_w = pl.pallas_call(
        _weighter_kernel,
        grid_spec=pltpu.PrefetchScalarGridSpec(
            num_scalar_prefetch=2,
            grid=(n_tiles,),
            in_specs=[row_spec(S_pad),
                      full_spec(w1), full_spec(b1),
                      full_spec(w2), full_spec(b2)],
            out_specs=(acc_spec(S_pad), acc_spec(S_pad)),
            scratch_shapes=[pltpu.VMEM((1, S_pad), jnp.float32)]),
        out_shape=(jax.ShapeDtypeStruct((1, S_pad), jnp.float32),
                   jax.ShapeDtypeStruct((1, S_pad), jnp.float32)),
        compiler_params=cp_reduce,
    )(nrows, k_arr, x, w1, b1, w2, b2)

    # Fold the channel reweighting into the first classnet weight:
    # (x * sw) @ cw1  ==  x @ (sw[:, None] * cw1)   (O(S*300) once, on XLA).
    cw1s = (cw1 * sparse_w[0][:, None]).astype(bf16)

    # ---- pass 2: BN1 batch statistics ---------------------------------------
    mu1, var1 = pl.pallas_call(
        _h1_stats_kernel,
        grid_spec=pltpu.PrefetchScalarGridSpec(
            num_scalar_prefetch=1,
            grid=(n_tiles,),
            in_specs=[row_spec(S_pad), full_spec(cw1s), full_spec(cb1)],
            out_specs=(acc_spec(H2), acc_spec(H2)),
            scratch_shapes=[pltpu.VMEM((1, H2), jnp.float32),
                            pltpu.VMEM((1, H2), jnp.float32)]),
        out_shape=(jax.ShapeDtypeStruct((1, H2), jnp.float32),
                   jax.ShapeDtypeStruct((1, H2), jnp.float32)),
        compiler_params=cp_reduce,
    )(nrows, x, cw1s, cb1)

    # Fold BN1 affine (scale1 * h1 + shift1) into the next Linear:
    #   (s*h + t) @ W + b  ==  h @ (s[:,None]*W) + (t @ W + b)
    scale1 = g1 * lax.rsqrt(var1 + BN_EPS)           # (1, H2)
    shift1 = be1 - mu1 * scale1                      # (1, H2)
    cw2f = (scale1[0][:, None] * cw2_f).astype(bf16)  # (H2, H3) bf16
    cb2f = cb2 + shift1 @ cw2_f                       # (1, H3) f32

    # ---- pass 3: BN2 batch statistics ---------------------------------------
    mu2, var2 = pl.pallas_call(
        _h2_stats_kernel,
        grid_spec=pltpu.PrefetchScalarGridSpec(
            num_scalar_prefetch=1,
            grid=(n_tiles,),
            in_specs=[row_spec(S_pad), full_spec(cw1s), full_spec(cb1),
                      full_spec(cw2f), full_spec(cb2f)],
            out_specs=(acc_spec(H3), acc_spec(H3)),
            scratch_shapes=[pltpu.VMEM((1, H3), jnp.float32),
                            pltpu.VMEM((1, H3), jnp.float32)]),
        out_shape=(jax.ShapeDtypeStruct((1, H3), jnp.float32),
                   jax.ShapeDtypeStruct((1, H3), jnp.float32)),
        compiler_params=cp_reduce,
    )(nrows, x, cw1s, cb1, cw2f, cb2f)

    # Fold BN2 affine into the final Linear.
    scale2 = g2 * lax.rsqrt(var2 + BN_EPS)            # (1, H3)
    shift2 = be2 - mu2 * scale2                       # (1, H3)
    cw3f = (scale2[0][:, None] * cw3_f).astype(bf16)  # (H3, C_pad) bf16
    cb3f = cb3 + shift2 @ cw3_f                       # (1, C_pad) f32

    # ---- pass 4: classnet output (batch-parallel, lane-dense logits) --------
    out_pad = pl.pallas_call(
        _classnet_out_kernel,
        grid_spec=pltpu.PrefetchScalarGridSpec(
            num_scalar_prefetch=0,
            grid=(n_tiles,),
            in_specs=[row_spec(S_pad), full_spec(cw1s), full_spec(cb1),
                      full_spec(cw2f), full_spec(cb2f),
                      full_spec(cw3f), full_spec(cb3f)],
            out_specs=row_spec(C_pad)),
        out_shape=jax.ShapeDtypeStruct((B_pad, C_pad), jnp.float32),
        compiler_params=cp_parallel,
    )(x, cw1s, cb1, cw2f, cb2f, cw3f, cb3f)

    return chan_w[0, :S], sparse_w[0, :S], out_pad[:B, :C]


# ---------------------------------------------------------------------------
# Deterministic parameter init (shapes from ANN.__init__)
# ---------------------------------------------------------------------------
def init_params(key, shortlist, class_size):
    def lin(k, fan_in, fan_out):
        kw, kb = jax.random.split(k)
        bound = 1.0 / jnp.sqrt(fan_in)
        w = jax.random.uniform(kw, (fan_in, fan_out), jnp.float32, -bound, bound)
        b = jax.random.uniform(kb, (1, fan_out), jnp.float32, -bound, bound)
        return w, b

    ks = jax.random.split(key, 5)
    w1, b1 = lin(ks[0], shortlist, 512)       # weighter[0]
    w2, b2 = lin(ks[1], 512, shortlist)       # weighter[2]
    cw1, cb1 = lin(ks[2], shortlist, 300)     # classnet[0]
    cw2, cb2 = lin(ks[3], 300, 200)           # classnet[3]
    cw3, cb3 = lin(ks[4], 200, class_size)    # classnet[6]
    return dict(
        w1=w1, b1=b1, w2=w2, b2=b2,
        cw1=cw1, cb1=cb1,
        g1=jnp.ones((1, 300), jnp.float32), be1=jnp.zeros((1, 300), jnp.float32),
        cw2=cw2, cb2=cb2,
        g2=jnp.ones((1, 200), jnp.float32), be2=jnp.zeros((1, 200), jnp.float32),
        cw3=cw3, cb3=cb3,
    )


# ---------------------------------------------------------------------------
# Pure-JAX f32 reference (for a sanity check)
# ---------------------------------------------------------------------------
def ann_forward_ref(x, p, k):
    h = jnp.maximum(x @ p["w1"] + p["b1"], 0.0)
    cw = jnp.abs(h @ p["w2"] + p["b2"])
    cw_mean = jnp.mean(cw, axis=0)
    sw = jnp.where(jnp.abs(cw_mean) < k, 0.0, cw_mean)
    rw = x * sw
    h1 = jnp.maximum(rw @ p["cw1"] + p["cb1"], 0.0)
    h1 = (h1 - h1.mean(0)) / jnp.sqrt(h1.var(0) + BN_EPS) * p["g1"] + p["be1"]
    h2 = jnp.maximum(h1 @ p["cw2"] + p["cb2"], 0.0)
    h2 = (h2 - h2.mean(0)) / jnp.sqrt(h2.var(0) + BN_EPS) * p["g2"] + p["be2"]
    return cw_mean, sw, h2 @ p["cw3"] + p["cb3"]


if __name__ == "__main__":
    key = jax.random.PRNGKey(0)
    B, SHORTLIST, CLASS_SIZE, NBANDS = 20, 16, 10, 64

    k_param, k_spec, k_idx = jax.random.split(key, 3)
    params = init_params(k_param, SHORTLIST, CLASS_SIZE)

    # Test conditioning: use non-negative hidden-layer biases so no BatchNorm
    # feature is "nearly dead" at this tiny batch (a near-zero batch variance
    # would amplify bf16-vs-f32 rounding into large normalized differences and
    # make the tolerance check flaky).  Forward semantics are unchanged.
    params["cb1"] = jnp.abs(params["cb1"])
    params["cb2"] = jnp.abs(params["cb2"])

    # Deterministic stand-in for self.indices (RandomFrog selection / n_bands).
    raw_indices = jnp.linspace(-2.0, 2.0, SHORTLIST)
    sel = jax.nn.sigmoid(raw_indices)                      # get_indices()

    # TODO(synk): RandomFrog band selection (selector.fit/get_support) has no
    # Pallas equivalent; indices are synthesized deterministically above.
    # `linterp` glue: linearly interpolate a deterministic spectral cube at the
    # fractional band positions (this callable is external to the torch module).
    spectra = jax.random.normal(k_spec, (B, NBANDS), jnp.float32)

    def linterp(pos):                                      # pos in (0, 1), shape (S,)
        t = pos * (NBANDS - 1)
        lo = jnp.clip(jnp.floor(t).astype(jnp.int32), 0, NBANDS - 2)
        frac = t - lo.astype(jnp.float32)
        left = spectra[:, lo]
        right = spectra[:, lo + 1]
        return left * (1.0 - frac) + right * frac          # (B, S)

    outputs = linterp(sel)

    # Exercise the Sparse epoch schedule (epoch=300, l0_norm=60 -> k = 0.2).
    sched = SparseSchedule("salinas")
    k_sched = float(sched.get_k(epoch=300, l0_norm=60))
    assert 0.0 <= k_sched <= 1.0

    # For the bf16-kernel vs f32-reference numeric check, place the hard
    # threshold at the midpoint of the largest gap in the (f32) channel-weight
    # distribution so borderline channels cannot flip between precisions.
    cw_probe, _, _ = ann_forward_ref(outputs, params, 0.0)
    srt = jnp.sort(cw_probe)
    gi = int(jnp.argmax(srt[1:] - srt[:-1]))
    k = float(0.5 * (srt[gi] + srt[gi + 1]))

    # tile_b=8 with B=20 -> 3 batch tiles (last one ragged) so the grid,
    # resident accumulators and row masking are all exercised.
    chan_w, sparse_w, out = ann_forward(outputs, params, k, tile_b=8)
    jax.block_until_ready((chan_w, sparse_w, out))

    cw_ref, sw_ref, out_ref = ann_forward_ref(outputs, params, k)
    assert chan_w.shape == (SHORTLIST,)
    assert sparse_w.shape == (SHORTLIST,)
    assert out.shape == (B, CLASS_SIZE)
    assert jnp.allclose(chan_w, cw_ref, rtol=5e-2, atol=5e-2)
    assert jnp.allclose(sparse_w, sw_ref, rtol=5e-2, atol=5e-2)
    assert jnp.allclose(out, out_ref, rtol=1e-1, atol=1e-1)

    print("KERNEL_OK")
</pallas_src>

<mosaic_0001>
module attributes {stable_mosaic.version = 11 : i64} {
  func.func @_weighter_kernel(%arg0: i32, %arg1: memref<1xi32, #tpu.memory_space<smem>>, %arg2: memref<1xf32, #tpu.memory_space<smem>>, %arg3: memref<8x128xf32, #tpu.memory_space<vmem>>, %arg4: memref<128x512xbf16, #tpu.memory_space<vmem>>, %arg5: memref<1x512xf32, #tpu.memory_space<vmem>>, %arg6: memref<512x128xbf16, #tpu.memory_space<vmem>>, %arg7: memref<1x128xf32, #tpu.memory_space<vmem>>, %arg8: memref<1x128xf32, #tpu.memory_space<vmem>>, %arg9: memref<1x128xf32, #tpu.memory_space<vmem>>, %arg10: memref<1x128xf32, #tpu.memory_space<vmem>>) attributes {dimension_semantics = [#tpu.dimension_semantics<arbitrary>], iteration_bounds = array<i64: 3>, scalar_prefetch = 2 : i64, scratch_operands = 1 : i64, tpu.core_type = #tpu.core_type<tc>, window_params = [{transform_indices = @transform_0, window_bounds = array<i64: 8, 128>}, {pipeline_mode = #tpu.pipeline_mode<synchronous>, transform_indices = @transform_1, window_bounds = array<i64: 128, 512>}, {pipeline_mode = #tpu.pipeline_mode<synchronous>, transform_indices = @transform_2, window_bounds = array<i64: 1, 512>}, {pipeline_mode = #tpu.pipeline_mode<synchronous>, transform_indices = @transform_3, window_bounds = array<i64: 512, 128>}, {pipeline_mode = #tpu.pipeline_mode<synchronous>, transform_indices = @transform_4, window_bounds = array<i64: 1, 128>}, {pipeline_mode = #tpu.pipeline_mode<synchronous>, transform_indices = @transform_5, window_bounds = array<i64: 1, 128>}, {pipeline_mode = #tpu.pipeline_mode<synchronous>, transform_indices = @transform_6, window_bounds = array<i64: 1, 128>}]} {
    %c0_i32 = arith.constant 0 : i32
    %0 = arith.cmpi eq, %arg0, %c0_i32 : i32
    %1 = arith.extui %0 : i1 to i32
    %c0_i32_0 = arith.constant 0 : i32
    %2 = arith.cmpi ne, %1, %c0_i32_0 : i32
    scf.if %2 {
      %cst_20 = arith.constant 0.000000e+00 : f32
      %38 = vector.broadcast %cst_20 : f32 to vector<1x128xf32>
      %c0_21 = arith.constant 0 : index
      %c0_22 = arith.constant 0 : index
      %39 = vector.load %arg10[%c0_21, %c0_22] : memref<1x128xf32, #tpu.memory_space<vmem>>, vector<1x128xf32>
      tpu.vector_store %arg10[%c0_21, %c0_22], %38 {strides = array<i32>} : memref<1x128xf32, #tpu.memory_space<vmem>>, vector<1x128xf32>,
    } else {
    }
    %c0 = arith.constant 0 : index
    %c0_1 = arith.constant 0 : index
    %3 = vector.load %arg3[%c0, %c0_1] : memref<8x128xf32, #tpu.memory_space<vmem>>, vector<8x128xf32>
    %4 = arith.truncf %3 : vector<8x128xf32> to vector<8x128xbf16>
    %c0_2 = arith.constant 0 : index
    %c0_3 = arith.constant 0 : index
    %5 = vector.load %arg4[%c0_2, %c0_3] : memref<128x512xbf16, #tpu.memory_space<vmem>>, vector<128x512xbf16>
    %cst = arith.constant dense<0.000000e+00> : vector<8x512xf32>
    %6 = tpu.matmul %4, %5, %cst {dimension_numbers = #tpu.dot_dimension_numbers<[1], [0], [0], [1], [0, 0, 1, 1], [], []>} : vector<8x128xbf16>, vector<128x512xbf16>, vector<8x512xf32> -> vector<8x512xf32>
    %c0_4 = arith.constant 0 : index
    %c0_5 = arith.constant 0 : index
    %7 = vector.load %arg5[%c0_4, %c0_5] : memref<1x512xf32, #tpu.memory_space<vmem>>, vector<1x512xf32>
    %8 = vector.broadcast %7 : vector<1x512xf32> to vector<8x512xf32>
    %9 = arith.addf %6, %8 : vector<8x512xf32>
    %cst_6 = arith.constant 0.000000e+00 : f32
    %10 = vector.broadcast %cst_6 : f32 to vector<8x512xf32>
    %11 = arith.maximumf %9, %10 : vector<8x512xf32>
    %12 = arith.truncf %11 : vector<8x512xf32> to vector<8x512xbf16>
    %c0_7 = arith.constant 0 : index
    %c0_8 = arith.constant 0 : index
    %13 = vector.load %arg6[%c0_7, %c0_8] : memref<512x128xbf16, #tpu.memory_space<vmem>>, vector<512x128xbf16>
    %cst_9 = arith.constant dense<0.000000e+00> : vector<8x128xf32>
    %14 = tpu.matmul %12, %13, %cst_9 {dimension_numbers = #tpu.dot_dimension_numbers<[1], [0], [0], [1], [0, 0, 1, 1], [], []>} : vector<8x512xbf16>, vector<512x128xbf16>, vector<8x128xf32> -> vector<8x128xf32>
    %c0_10 = arith.constant 0 : index
    %c0_11 = arith.constant 0 : index
    %15 = vector.load %arg7[%c0_10, %c0_11] : memref<1x128xf32, #tpu.memory_space<vmem>>, vector<1x128xf32>
    %16 = vector.broadcast %15 : vector<1x128xf32> to vector<8x128xf32>
    %17 = arith.addf %14, %16 : vector<8x128xf32>
    %18 = math.absf %17 : vector<8x128xf32>
    %c8_i32 = arith.constant 8 : i32
    %19 = arith.muli %arg0, %c8_i32 : i32
    %20 = tpu.iota {dimensions = array<i32: 0>} : vector<8x1xi32>
    %21 = vector.broadcast %19 : i32 to vector<8x1xi32>
    %22 = arith.addi %21, %20 : vector<8x1xi32>
    %c0_12 = arith.constant 0 : index
    %23 = memref.load %arg1[%c0_12] : memref<1xi32, #tpu.memory_space<smem>>
    %24 = vector.broadcast %23 : i32 to vector<8x1xi32>
    %25 = arith.cmpi slt, %22, %24 : vector<8x1xi32>
    %cst_13 = arith.constant 0.000000e+00 : f32
    %26 = vector.shape_cast %25 : vector<8x1xi1> to vector<8x1xi1>
    %27 = vector.broadcast %26 : vector<8x1xi1> to vector<8x128xi1>
    %28 = vector.broadcast %cst_13 : f32 to vector<8x128xf32>
    %29 = arith.select %27, %18, %28 : vector<8x128xi1>, vector<8x128xf32>
    %c0_14 = arith.constant 0 : index
    %c0_15 = arith.constant 0 : index
    %30 = vector.load %arg10[%c0_14, %c0_15] : memref<1x128xf32, #tpu.memory_space<vmem>>, vector<1x128xf32>
    %cst_16 = arith.constant dense<0.000000e+00> : vector<128xf32>
    %31 = vector.multi_reduction <add>, %29, %cst_16 [0] : vector<8x128xf32> to vector<128xf32>
    %32 = vector.shape_cast %31 : vector<128xf32> to vector<1x128xf32>
    %33 = arith.addf %30, %32 : vector<1x128xf32>
    %c0_17 = arith.constant 0 : index
    %c0_18 = arith.constant 0 : index
    %34 = vector.load %arg10[%c0_17, %c0_18] : memref<1x128xf32, #tpu.memory_space<vmem>>, vector<1x128xf32>
    tpu.vector_store %arg10[%c0_17, %c0_18], %33 {strides = array<i32>} : memref<1x128xf32, #tpu.memory_space<vmem>>, vector<1x128xf32>,
    %c2_i32 = arith.constant 2 : i32
    %35 = arith.cmpi eq, %arg0, %c2_i32 : i32
    %36 = arith.extui %35 : i1 to i32
    %c0_i32_19 = arith.constant 0 : i32
    %37 = arith.cmpi ne, %36, %c0_i32_19 : i32
    scf.if %37 {
      %c0_20 = arith.constant 0 : index
      %38 = memref.load %arg1[%c0_20] : memref<1xi32, #tpu.memory_space<smem>>
      %39 = arith.sitofp %38 : i32 to f32
      %cst_21 = arith.constant 1.000000e+00 : f32
      %40 = arith.divf %cst_21, %39 : f32
      %c0_22 = arith.constant 0 : index
      %c0_23 = arith.constant 0 : index
      %41 = vector.load %arg10[%c0_22, %c0_23] : memref<1x128xf32, #tpu.memory_space<vmem>>, vector<1x128xf32>
      %42 = vector.broadcast %40 : f32 to vector<1x128xf32>
      %43 = arith.mulf %41, %42 : vector<1x128xf32>
      %c0_24 = arith.constant 0 : index
      %c0_25 = arith.constant 0 : index
      %44 = vector.load %arg8[%c0_24, %c0_25] : memref<1x128xf32, #tpu.memory_space<vmem>>, vector<1x128xf32>
      tpu.vector_store %arg8[%c0_24, %c0_25], %43 {strides = array<i32>} : memref<1x128xf32, #tpu.memory_space<vmem>>, vector<1x128xf32>,
      %c0_26 = arith.constant 0 : index
      %45 = memref.load %arg2[%c0_26] : memref<1xf32, #tpu.memory_space<smem>>
      %46 = vector.broadcast %45 : f32 to vector<1x128xf32>
      %47 = arith.cmpf olt, %43, %46 : vector<1x128xf32>
      %cst_27 = arith.constant 0.000000e+00 : f32
      %48 = vector.broadcast %cst_27 : f32 to vector<1x128xf32>
      %49 = arith.select %47, %48, %43 : vector<1x128xi1>, vector<1x128xf32>
      %c0_28 = arith.constant 0 : index
      %c0_29 = arith.constant 0 : index
      %50 = vector.load %arg9[%c0_28, %c0_29] : memref<1x128xf32, #tpu.memory_space<vmem>>, vector<1x128xf32>
      tpu.vector_store %arg9[%c0_28, %c0_29], %49 {strides = array<i32>} : memref<1x128xf32, #tpu.memory_space<vmem>>, vector<1x128xf32>,
    } else {
    }
    return
  }
  func.func @transform_0(%arg0: i32, %arg1: memref<1xi32, #tpu.memory_space<smem>>, %arg2: memref<1xf32, #tpu.memory_space<smem>>) -> (i32, i32) {
    %c0_i32 = arith.constant 0 : i32
    %c0_i32_0 = arith.constant 0 : i32
    return %arg0, %c0_i32 : i32, i32
  }
  func.func @transform_1(%arg0: i32, %arg1: memref<1xi32, #tpu.memory_space<smem>>, %arg2: memref<1xf32, #tpu.memory_space<smem>>) -> (i32, i32) {
    %c0_i32 = arith.constant 0 : i32
    %c0_i32_0 = arith.constant 0 : i32
    %c0_i32_1 = arith.constant 0 : i32
    return %c0_i32, %c0_i32_0 : i32, i32
  }
  func.func @transform_2(%arg0: i32, %arg1: memref<1xi32, #tpu.memory_space<smem>>, %arg2: memref<1xf32, #tpu.memory_space<smem>>) -> (i32, i32) {
    %c0_i32 = arith.constant 0 : i32
    %c0_i32_0 = arith.constant 0 : i32
    %c0_i32_1 = arith.constant 0 : i32
    return %c0_i32, %c0_i32_0 : i32, i32
  }
  func.func @transform_3(%arg0: i32, %arg1: memref<1xi32, #tpu.memory_space<smem>>, %arg2: memref<1xf32, #tpu.memory_space<smem>>) -> (i32, i32) {
    %c0_i32 = arith.constant 0 : i32
    %c0_i32_0 = arith.constant 0 : i32
    %c0_i32_1 = arith.constant 0 : i32
    return %c0_i32, %c0_i32_0 : i32, i32
  }
  func.func @transform_4(%arg0: i32, %arg1: memref<1xi32, #tpu.memory_space<smem>>, %arg2: memref<1xf32, #tpu.memory_space<smem>>) -> (i32, i32) {
    %c0_i32 = arith.constant 0 : i32
    %c0_i32_0 = arith.constant 0 : i32
    %c0_i32_1 = arith.constant 0 : i32
    return %c0_i32, %c0_i32_0 : i32, i32
  }
  func.func @transform_5(%arg0: i32, %arg1: memref<1xi32, #tpu.memory_space<smem>>, %arg2: memref<1xf32, #tpu.memory_space<smem>>) -> (i32, i32) {
    %c0_i32 = arith.constant 0 : i32
    %c0_i32_0 = arith.constant 0 : i32
    %c0_i32_1 = arith.constant 0 : i32
    return %c0_i32, %c0_i32_0 : i32, i32
  }
  func.func @transform_6(%arg0: i32, %arg1: memref<1xi32, #tpu.memory_space<smem>>, %arg2: memref<1xf32, #tpu.memory_space<smem>>) -> (i32, i32) {
    %c0_i32 = arith.constant 0 : i32
    %c0_i32_0 = arith.constant 0 : i32
    %c0_i32_1 = arith.constant 0 : i32
    return %c0_i32, %c0_i32_0 : i32, i32
  }
}

module attributes {stable_mosaic.version = 11 : i64} {
  func.func @_h1_stats_kernel(%arg0: i32, %arg1: memref<1xi32, #tpu.memory_space<smem>>, %arg2: memref<8x128xf32, #tpu.memory_space<vmem>>, %arg3: memref<128x384xbf16, #tpu.memory_space<vmem>>, %arg4: memref<1x384xf32, #tpu.memory_space<vmem>>, %arg5: memref<1x384xf32, #tpu.memory_space<vmem>>, %arg6: memref<1x384xf32, #tpu.memory_space<vmem>>, %arg7: memref<1x384xf32, #tpu.memory_space<vmem>>, %arg8: memref<1x384xf32, #tpu.memory_space<vmem>>) attributes {dimension_semantics = [#tpu.dimension_semantics<arbitrary>], iteration_bounds = array<i64: 3>, scalar_prefetch = 1 : i64, scratch_operands = 2 : i64, tpu.core_type = #tpu.core_type<tc>, window_params = [{transform_indices = @transform_0, window_bounds = array<i64: 8, 128>}, {pipeline_mode = #tpu.pipeline_mode<synchronous>, transform_indices = @transform_1, window_bounds = array<i64: 128, 384>}, {pipeline_mode = #tpu.pipeline_mode<synchronous>, transform_indices = @transform_2, window_bounds = array<i64: 1, 384>}, {pipeline_mode = #tpu.pipeline_mode<synchronous>, transform_indices = @transform_3, window_bounds = array<i64: 1, 384>}, {pipeline_mode = #tpu.pipeline_mode<synchronous>, transform_indices = @transform_4, window_bounds = array<i64: 1, 384>}]} {
    %c0_i32 = arith.constant 0 : i32
    %0 = arith.cmpi eq, %arg0, %c0_i32 : i32
    %1 = arith.extui %0 : i1 to i32
    %c0_i32_0 = arith.constant 0 : i32
    %2 = arith.cmpi ne, %1, %c0_i32_0 : i32
    scf.if %2 {
      %cst_20 = arith.constant 0.000000e+00 : f32
      %37 = vector.broadcast %cst_20 : f32 to vector<1x384xf32>
      %c0_21 = arith.constant 0 : index
      %c0_22 = arith.constant 0 : index
      %38 = vector.load %arg7[%c0_21, %c0_22] : memref<1x384xf32, #tpu.memory_space<vmem>>, vector<1x384xf32>
      tpu.vector_store %arg7[%c0_21, %c0_22], %37 {strides = array<i32>} : memref<1x384xf32, #tpu.memory_space<vmem>>, vector<1x384xf32>,
      %cst_23 = arith.constant 0.000000e+00 : f32
      %39 = vector.broadcast %cst_23 : f32 to vector<1x384xf32>
      %c0_24 = arith.constant 0 : index
      %c0_25 = arith.constant 0 : index
      %40 = vector.load %arg8[%c0_24, %c0_25] : memref<1x384xf32, #tpu.memory_space<vmem>>, vector<1x384xf32>
      tpu.vector_store %arg8[%c0_24, %c0_25], %39 {strides = array<i32>} : memref<1x384xf32, #tpu.memory_space<vmem>>, vector<1x384xf32>,
    } else {
    }
    %c0 = arith.constant 0 : index
    %c0_1 = arith.constant 0 : index
    %3 = vector.load %arg2[%c0, %c0_1] : memref<8x128xf32, #tpu.memory_space<vmem>>, vector<8x128xf32>
    %4 = arith.truncf %3 : vector<8x128xf32> to vector<8x128xbf16>
    %c0_2 = arith.constant 0 : index
    %c0_3 = arith.constant 0 : index
    %5 = vector.load %arg3[%c0_2, %c0_3] : memref<128x384xbf16, #tpu.memory_space<vmem>>, vector<128x384xbf16>
    %cst = arith.constant dense<0.000000e+00> : vector<8x384xf32>
    %6 = tpu.matmul %4, %5, %cst {dimension_numbers = #tpu.dot_dimension_numbers<[1], [0], [0], [1], [0, 0, 1, 1], [], []>} : vector<8x128xbf16>, vector<128x384xbf16>, vector<8x384xf32> -> vector<8x384xf32>
    %c0_4 = arith.constant 0 : index
    %c0_5 = arith.constant 0 : index
    %7 = vector.load %arg4[%c0_4, %c0_5] : memref<1x384xf32, #tpu.memory_space<vmem>>, vector<1x384xf32>
    %8 = vector.broadcast %7 : vector<1x384xf32> to vector<8x384xf32>
    %9 = arith.addf %6, %8 : vector<8x384xf32>
    %cst_6 = arith.constant 0.000000e+00 : f32
    %10 = vector.broadcast %cst_6 : f32 to vector<8x384xf32>
    %11 = arith.maximumf %9, %10 : vector<8x384xf32>
    %c8_i32 = arith.constant 8 : i32
    %12 = arith.muli %arg0, %c8_i32 : i32
    %13 = tpu.iota {dimensions = array<i32: 0>} : vector<8x1xi32>
    %14 = vector.broadcast %12 : i32 to vector<8x1xi32>
    %15 = arith.addi %14, %13 : vector<8x1xi32>
    %c0_7 = arith.constant 0 : index
    %16 = memref.load %arg1[%c0_7] : memref<1xi32, #tpu.memory_space<smem>>
    %17 = vector.broadcast %16 : i32 to vector<8x1xi32>
    %18 = arith.cmpi slt, %15, %17 : vector<8x1xi32>
    %cst_8 = arith.constant 0.000000e+00 : f32
    %19 = vector.shape_cast %18 : vector<8x1xi1> to vector<8x1xi1>
    %20 = vector.broadcast %19 : vector<8x1xi1> to vector<8x384xi1>
    %21 = vector.broadcast %cst_8 : f32 to vector<8x384xf32>
    %22 = arith.select %20, %11, %21 : vector<8x384xi1>, vector<8x384xf32>
    %c0_9 = arith.constant 0 : index
    %c0_10 = arith.constant 0 : index
    %23 = vector.load %arg7[%c0_9, %c0_10] : memref<1x384xf32, #tpu.memory_space<vmem>>, vector<1x384xf32>
    %cst_11 = arith.constant dense<0.000000e+00> : vector<384xf32>
    %24 = vector.multi_reduction <add>, %22, %cst_11 [0] : vector<8x384xf32> to vector<384xf32>
    %25 = vector.shape_cast %24 : vector<384xf32> to vector<1x384xf32>
    %26 = arith.addf %23, %25 : vector<1x384xf32>
    %c0_12 = arith.constant 0 : index
    %c0_13 = arith.constant 0 : index
    %27 = vector.load %arg7[%c0_12, %c0_13] : memref<1x384xf32, #tpu.memory_space<vmem>>, vector<1x384xf32>
    tpu.vector_store %arg7[%c0_12, %c0_13], %26 {strides = array<i32>} : memref<1x384xf32, #tpu.memory_space<vmem>>, vector<1x384xf32>,
    %c0_14 = arith.constant 0 : index
    %c0_15 = arith.constant 0 : index
    %28 = vector.load %arg8[%c0_14, %c0_15] : memref<1x384xf32, #tpu.memory_space<vmem>>, vector<1x384xf32>
    %29 = arith.mulf %22, %22 : vector<8x384xf32>
    %cst_16 = arith.constant dense<0.000000e+00> : vector<384xf32>
    %30 = vector.multi_reduction <add>, %29, %cst_16 [0] : vector<8x384xf32> to vector<384xf32>
    %31 = vector.shape_cast %30 : vector<384xf32> to vector<1x384xf32>
    %32 = arith.addf %28, %31 : vector<1x384xf32>
    %c0_17 = arith.constant 0 : index
    %c0_18 = arith.constant 0 : index
    %33 = vector.load %arg8[%c0_17, %c0_18] : memref<1x384xf32, #tpu.memory_space<vmem>>, vector<1x384xf32>
    tpu.vector_store %arg8[%c0_17, %c0_18], %32 {strides = array<i32>} : memref<1x384xf32, #tpu.memory_space<vmem>>, vector<1x384xf32>,
    %c2_i32 = arith.constant 2 : i32
    %34 = arith.cmpi eq, %arg0, %c2_i32 : i32
    %35 = arith.extui %34 : i1 to i32
    %c0_i32_19 = arith.constant 0 : i32
    %36 = arith.cmpi ne, %35, %c0_i32_19 : i32
    scf.if %36 {
      %c0_20 = arith.constant 0 : index
      %37 = memref.load %arg1[%c0_20] : memref<1xi32, #tpu.memory_space<smem>>
      %38 = arith.sitofp %37 : i32 to f32
      %cst_21 = arith.constant 1.000000e+00 : f32
      %39 = arith.divf %cst_21, %38 : f32
      %c0_22 = arith.constant 0 : index
      %c0_23 = arith.constant 0 : index
      %40 = vector.load %arg7[%c0_22, %c0_23] : memref<1x384xf32, #tpu.memory_space<vmem>>, vector<1x384xf32>
      %41 = vector.broadcast %39 : f32 to vector<1x384xf32>
      %42 = arith.mulf %40, %41 : vector<1x384xf32>
      %c0_24 = arith.constant 0 : index
      %c0_25 = arith.constant 0 : index
      %43 = vector.load %arg8[%c0_24, %c0_25] : memref<1x384xf32, #tpu.memory_space<vmem>>, vector<1x384xf32>
      %44 = vector.broadcast %39 : f32 to vector<1x384xf32>
      %45 = arith.mulf %43, %44 : vector<1x384xf32>
      %46 = arith.mulf %42, %42 : vector<1x384xf32>
      %47 = arith.subf %45, %46 : vector<1x384xf32>
      %cst_26 = arith.constant 0.000000e+00 : f32
      %48 = vector.broadcast %cst_26 : f32 to vector<1x384xf32>
      %49 = arith.maximumf %47, %48 : vector<1x384xf32>
      %c0_27 = arith.constant 0 : index
      %c0_28 = arith.constant 0 : index
      %50 = vector.load %arg5[%c0_27, %c0_28] : memref<1x384xf32, #tpu.memory_space<vmem>>, vector<1x384xf32>
      tpu.vector_store %arg5[%c0_27, %c0_28], %42 {strides = array<i32>} : memref<1x384xf32, #tpu.memory_space<vmem>>, vector<1x384xf32>,
      %c0_29 = arith.constant 0 : index
      %c0_30 = arith.constant 0 : index
      %51 = vector.load %arg6[%c0_29, %c0_30] : memref<1x384xf32, #tpu.memory_space<vmem>>, vector<1x384xf32>
      tpu.vector_store %arg6[%c0_29, %c0_30], %49 {strides = array<i32>} : memref<1x384xf32, #tpu.memory_space<vmem>>, vector<1x384xf32>,
    } else {
    }
    return
  }
  func.func @transform_0(%arg0: i32, %arg1: memref<1xi32, #tpu.memory_space<smem>>) -> (i32, i32) {
    %c0_i32 = arith.constant 0 : i32
    %c0_i32_0 = arith.constant 0 : i32
    return %arg0, %c0_i32 : i32, i32
  }
  func.func @transform_1(%arg0: i32, %arg1: memref<1xi32, #tpu.memory_space<smem>>) -> (i32, i32) {
    %c0_i32 = arith.constant 0 : i32
    %c0_i32_0 = arith.constant 0 : i32
    %c0_i32_1 = arith.constant 0 : i32
    return %c0_i32, %c0_i32_0 : i32, i32
  }
  func.func @transform_2(%arg0: i32, %arg1: memref<1xi32, #tpu.memory_space<smem>>) -> (i32, i32) {
    %c0_i32 = arith.constant 0 : i32
    %c0_i32_0 = arith.constant 0 : i32
    %c0_i32_1 = arith.constant 0 : i32
    return %c0_i32, %c0_i32_0 : i32, i32
  }
  func.func @transform_3(%arg0: i32, %arg1: memref<1xi32, #tpu.memory_space<smem>>) -> (i32, i32) {
    %c0_i32 = arith.constant 0 : i32
    %c0_i32_0 = arith.constant 0 : i32
    %c0_i32_1 = arith.constant 0 : i32
    return %c0_i32, %c0_i32_0 : i32, i32
  }
  func.func @transform_4(%arg0: i32, %arg1: memref<1xi32, #tpu.memory_space<smem>>) -> (i32, i32) {
    %c0_i32 = arith.constant 0 : i32
    %c0_i32_0 = arith.constant 0 : i32
    %c0_i32_1 = arith.constant 0 : i32
    return %c0_i32, %c0_i32_0 : i32, i32
  }
}

module attributes {stable_mosaic.version = 11 : i64} {
  func.func @_h2_stats_kernel(%arg0: i32, %arg1: memref<1xi32, #tpu.memory_space<smem>>, %arg2: memref<8x128xf32, #tpu.memory_space<vmem>>, %arg3: memref<128x384xbf16, #tpu.memory_space<vmem>>, %arg4: memref<1x384xf32, #tpu.memory_space<vmem>>, %arg5: memref<384x256xbf16, #tpu.memory_space<vmem>>, %arg6: memref<1x256xf32, #tpu.memory_space<vmem>>, %arg7: memref<1x256xf32, #tpu.memory_space<vmem>>, %arg8: memref<1x256xf32, #tpu.memory_space<vmem>>, %arg9: memref<1x256xf32, #tpu.memory_space<vmem>>, %arg10: memref<1x256xf32, #tpu.memory_space<vmem>>) attributes {dimension_semantics = [#tpu.dimension_semantics<arbitrary>], iteration_bounds = array<i64: 3>, scalar_prefetch = 1 : i64, scratch_operands = 2 : i64, tpu.core_type = #tpu.core_type<tc>, window_params = [{transform_indices = @transform_0, window_bounds = array<i64: 8, 128>}, {pipeline_mode = #tpu.pipeline_mode<synchronous>, transform_indices = @transform_1, window_bounds = array<i64: 128, 384>}, {pipeline_mode = #tpu.pipeline_mode<synchronous>, transform_indices = @transform_2, window_bounds = array<i64: 1, 384>}, {pipeline_mode = #tpu.pipeline_mode<synchronous>, transform_indices = @transform_3, window_bounds = array<i64: 384, 256>}, {pipeline_mode = #tpu.pipeline_mode<synchronous>, transform_indices = @transform_4, window_bounds = array<i64: 1, 256>}, {pipeline_mode = #tpu.pipeline_mode<synchronous>, transform_indices = @transform_5, window_bounds = array<i64: 1, 256>}, {pipeline_mode = #tpu.pipeline_mode<synchronous>, transform_indices = @transform_6, window_bounds = array<i64: 1, 256>}]} {
    %c0_i32 = arith.constant 0 : i32
    %0 = arith.cmpi eq, %arg0, %c0_i32 : i32
    %1 = arith.extui %0 : i1 to i32
    %c0_i32_0 = arith.constant 0 : i32
    %2 = arith.cmpi ne, %1, %c0_i32_0 : i32
    scf.if %2 {
      %cst_26 = arith.constant 0.000000e+00 : f32
      %45 = vector.broadcast %cst_26 : f32 to vector<1x256xf32>
      %c0_27 = arith.constant 0 : index
      %c0_28 = arith.constant 0 : index
      %46 = vector.load %arg9[%c0_27, %c0_28] : memref<1x256xf32, #tpu.memory_space<vmem>>, vector<1x256xf32>
      tpu.vector_store %arg9[%c0_27, %c0_28], %45 {strides = array<i32>} : memref<1x256xf32, #tpu.memory_space<vmem>>, vector<1x256xf32>,
      %cst_29 = arith.constant 0.000000e+00 : f32
      %47 = vector.broadcast %cst_29 : f32 to vector<1x256xf32>
      %c0_30 = arith.constant 0 : index
      %c0_31 = arith.constant 0 : index
      %48 = vector.load %arg10[%c0_30, %c0_31] : memref<1x256xf32, #tpu.memory_space<vmem>>, vector<1x256xf32>
      tpu.vector_store %arg10[%c0_30, %c0_31], %47 {strides = array<i32>} : memref<1x256xf32, #tpu.memory_space<vmem>>, vector<1x256xf32>,
    } else {
    }
    %c0 = arith.constant 0 : index
    %c0_1 = arith.constant 0 : index
    %3 = vector.load %arg2[%c0, %c0_1] : memref<8x128xf32, #tpu.memory_space<vmem>>, vector<8x128xf32>
    %4 = arith.truncf %3 : vector<8x128xf32> to vector<8x128xbf16>
    %c0_2 = arith.constant 0 : index
    %c0_3 = arith.constant 0 : index
    %5 = vector.load %arg3[%c0_2, %c0_3] : memref<128x384xbf16, #tpu.memory_space<vmem>>, vector<128x384xbf16>
    %cst = arith.constant dense<0.000000e+00> : vector<8x384xf32>
    %6 = tpu.matmul %4, %5, %cst {dimension_numbers = #tpu.dot_dimension_numbers<[1], [0], [0], [1], [0, 0, 1, 1], [], []>} : vector<8x128xbf16>, vector<128x384xbf16>, vector<8x384xf32> -> vector<8x384xf32>
    %c0_4 = arith.constant 0 : index
    %c0_5 = arith.constant 0 : index
    %7 = vector.load %arg4[%c0_4, %c0_5] : memref<1x384xf32, #tpu.memory_space<vmem>>, vector<1x384xf32>
    %8 = vector.broadcast %7 : vector<1x384xf32> to vector<8x384xf32>
    %9 = arith.addf %6, %8 : vector<8x384xf32>
    %cst_6 = arith.constant 0.000000e+00 : f32
    %10 = vector.broadcast %cst_6 : f32 to vector<8x384xf32>
    %11 = arith.maximumf %9, %10 : vector<8x384xf32>
    %12 = arith.truncf %11 : vector<8x384xf32> to vector<8x384xbf16>
    %c0_7 = arith.constant 0 : index
    %c0_8 = arith.constant 0 : index
    %13 = vector.load %arg5[%c0_7, %c0_8] : memref<384x256xbf16, #tpu.memory_space<vmem>>, vector<384x256xbf16>
    %cst_9 = arith.constant dense<0.000000e+00> : vector<8x256xf32>
    %14 = tpu.matmul %12, %13, %cst_9 {dimension_numbers = #tpu.dot_dimension_numbers<[1], [0], [0], [1], [0, 0, 1, 1], [], []>} : vector<8x384xbf16>, vector<384x256xbf16>, vector<8x256xf32> -> vector<8x256xf32>
    %c0_10 = arith.constant 0 : index
    %c0_11 = arith.constant 0 : index
    %15 = vector.load %arg6[%c0_10, %c0_11] : memref<1x256xf32, #tpu.memory_space<vmem>>, vector<1x256xf32>
    %16 = vector.broadcast %15 : vector<1x256xf32> to vector<8x256xf32>
    %17 = arith.addf %14, %16 : vector<8x256xf32>
    %cst_12 = arith.constant 0.000000e+00 : f32
    %18 = vector.broadcast %cst_12 : f32 to vector<8x256xf32>
    %19 = arith.maximumf %17, %18 : vector<8x256xf32>
    %c8_i32 = arith.constant 8 : i32
    %20 = arith.muli %arg0, %c8_i32 : i32
    %21 = tpu.iota {dimensions = array<i32: 0>} : vector<8x1xi32>
    %22 = vector.broadcast %20 : i32 to vector<8x1xi32>
    %23 = arith.addi %22, %21 : vector<8x1xi32>
    %c0_13 = arith.constant 0 : index
    %24 = memref.load %arg1[%c0_13] : memref<1xi32, #tpu.memory_space<smem>>
    %25 = vector.broadcast %24 : i32 to vector<8x1xi32>
    %26 = arith.cmpi slt, %23, %25 : vector<8x1xi32>
    %cst_14 = arith.constant 0.000000e+00 : f32
    %27 = vector.shape_cast %26 : vector<8x1xi1> to vector<8x1xi1>
    %28 = vector.broadcast %27 : vector<8x1xi1> to vector<8x256xi1>
    %29 = vector.broadcast %cst_14 : f32 to vector<8x256xf32>
    %30 = arith.select %28, %19, %29 : vector<8x256xi1>, vector<8x256xf32>
    %c0_15 = arith.constant 0 : index
    %c0_16 = arith.constant 0 : index
    %31 = vector.load %arg9[%c0_15, %c0_16] : memref<1x256xf32, #tpu.memory_space<vmem>>, vector<1x256xf32>
    %cst_17 = arith.constant dense<0.000000e+00> : vector<256xf32>
    %32 = vector.multi_reduction <add>, %30, %cst_17 [0] : vector<8x256xf32> to vector<256xf32>
    %33 = vector.shape_cast %32 : vector<256xf32> to vector<1x256xf32>
    %34 = arith.addf %31, %33 : vector<1x256xf32>
    %c0_18 = arith.constant 0 : index
    %c0_19 = arith.constant 0 : index
    %35 = vector.load %arg9[%c0_18, %c0_19] : memref<1x256xf32, #tpu.memory_space<vmem>>, vector<1x256xf32>
    tpu.vector_store %arg9[%c0_18, %c0_19], %34 {strides = array<i32>} : memref<1x256xf32, #tpu.memory_space<vmem>>, vector<1x256xf32>,
    %c0_20 = arith.constant 0 : index
    %c0_21 = arith.constant 0 : index
    %36 = vector.load %arg10[%c0_20, %c0_21] : memref<1x256xf32, #tpu.memory_space<vmem>>, vector<1x256xf32>
    %37 = arith.mulf %30, %30 : vector<8x256xf32>
    %cst_22 = arith.constant dense<0.000000e+00> : vector<256xf32>
    %38 = vector.multi_reduction <add>, %37, %cst_22 [0] : vector<8x256xf32> to vector<256xf32>
    %39 = vector.shape_cast %38 : vector<256xf32> to vector<1x256xf32>
    %40 = arith.addf %36, %39 : vector<1x256xf32>
    %c0_23 = arith.constant 0 : index
    %c0_24 = arith.constant 0 : index
    %41 = vector.load %arg10[%c0_23, %c0_24] : memref<1x256xf32, #tpu.memory_space<vmem>>, vector<1x256xf32>
    tpu.vector_store %arg10[%c0_23, %c0_24], %40 {strides = array<i32>} : memref<1x256xf32, #tpu.memory_space<vmem>>, vector<1x256xf32>,
    %c2_i32 = arith.constant 2 : i32
    %42 = arith.cmpi eq, %arg0, %c2_i32 : i32
    %43 = arith.extui %42 : i1 to i32
    %c0_i32_25 = arith.constant 0 : i32
    %44 = arith.cmpi ne, %43, %c0_i32_25 : i32
    scf.if %44 {
      %c0_26 = arith.constant 0 : index
      %45 = memref.load %arg1[%c0_26] : memref<1xi32, #tpu.memory_space<smem>>
      %46 = arith.sitofp %45 : i32 to f32
      %cst_27 = arith.constant 1.000000e+00 : f32
      %47 = arith.divf %cst_27, %46 : f32
      %c0_28 = arith.constant 0 : index
      %c0_29 = arith.constant 0 : index
      %48 = vector.load %arg9[%c0_28, %c0_29] : memref<1x256xf32, #tpu.memory_space<vmem>>, vector<1x256xf32>
      %49 = vector.broadcast %47 : f32 to vector<1x256xf32>
      %50 = arith.mulf %48, %49 : vector<1x256xf32>
      %c0_30 = arith.constant 0 : index
      %c0_31 = arith.constant 0 : index
      %51 = vector.load %arg10[%c0_30, %c0_31] : memref<1x256xf32, #tpu.memory_space<vmem>>, vector<1x256xf32>
      %52 = vector.broadcast %47 : f32 to vector<1x256xf32>
      %53 = arith.mulf %51, %52 : vector<1x256xf32>
      %54 = arith.mulf %50, %50 : vector<1x256xf32>
      %55 = arith.subf %53, %54 : vector<1x256xf32>
      %cst_32 = arith.constant 0.000000e+00 : f32
      %56 = vector.broadcast %cst_32 : f32 to vector<1x256xf32>
      %57 = arith.maximumf %55, %56 : vector<1x256xf32>
      %c0_33 = arith.constant 0 : index
      %c0_34 = arith.constant 0 : index
      %58 = vector.load %arg7[%c0_33, %c0_34] : memref<1x256xf32, #tpu.memory_space<vmem>>, vector<1x256xf32>
      tpu.vector_store %arg7[%c0_33, %c0_34], %50 {strides = array<i32>} : memref<1x256xf32, #tpu.memory_space<vmem>>, vector<1x256xf32>,
      %c0_35 = arith.constant 0 : index
      %c0_36 = arith.constant 0 : index
      %59 = vector.load %arg8[%c0_35, %c0_36] : memref<1x256xf32, #tpu.memory_space<vmem>>, vector<1x256xf32>
      tpu.vector_store %arg8[%c0_35, %c0_36], %57 {strides = array<i32>} : memref<1x256xf32, #tpu.memory_space<vmem>>, vector<1x256xf32>,
    } else {
    }
    return
  }
  func.func @transform_0(%arg0: i32, %arg1: memref<1xi32, #tpu.memory_space<smem>>) -> (i32, i32) {
    %c0_i32 = arith.constant 0 : i32
    %c0_i32_0 = arith.constant 0 : i32
    return %arg0, %c0_i32 : i32, i32
  }
  func.func @transform_1(%arg0: i32, %arg1: memref<1xi32, #tpu.memory_space<smem>>) -> (i32, i32) {
    %c0_i32 = arith.constant 0 : i32
    %c0_i32_0 = arith.constant 0 : i32
    %c0_i32_1 = arith.constant 0 : i32
    return %c0_i32, %c0_i32_0 : i32, i32
  }
  func.func @transform_2(%arg0: i32, %arg1: memref<1xi32, #tpu.memory_space<smem>>) -> (i32, i32) {
    %c0_i32 = arith.constant 0 : i32
    %c0_i32_0 = arith.constant 0 : i32
    %c0_i32_1 = arith.constant 0 : i32
    return %c0_i32, %c0_i32_0 : i32, i32
  }
  func.func @transform_3(%arg0: i32, %arg1: memref<1xi32, #tpu.memory_space<smem>>) -> (i32, i32) {
    %c0_i32 = arith.constant 0 : i32
    %c0_i32_0 = arith.constant 0 : i32
    %c0_i32_1 = arith.constant 0 : i32
    return %c0_i32, %c0_i32_0 : i32, i32
  }
  func.func @transform_4(%arg0: i32, %arg1: memref<1xi32, #tpu.memory_space<smem>>) -> (i32, i32) {
    %c0_i32 = arith.constant 0 : i32
    %c0_i32_0 = arith.constant 0 : i32
    %c0_i32_1 = arith.constant 0 : i32
    return %c0_i32, %c0_i32_0 : i32, i32
  }
  func.func @transform_5(%arg0: i32, %arg1: memref<1xi32, #tpu.memory_space<smem>>) -> (i32, i32) {
    %c0_i32 = arith.constant 0 : i32
    %c0_i32_0 = arith.constant 0 : i32
    %c0_i32_1 = arith.constant 0 : i32
    return %c0_i32, %c0_i32_0 : i32, i32
  }
  func.func @transform_6(%arg0: i32, %arg1: memref<1xi32, #tpu.memory_space<smem>>) -> (i32, i32) {
    %c0_i32 = arith.constant 0 : i32
    %c0_i32_0 = arith.constant 0 : i32
    %c0_i32_1 = arith.constant 0 : i32
    return %c0_i32, %c0_i32_0 : i32, i32
  }
}

module attributes {stable_mosaic.version = 11 : i64} {
  func.func @_classnet_out_kernel(%arg0: i32, %arg1: memref<8x128xf32, #tpu.memory_space<vmem>>, %arg2: memref<128x384xbf16, #tpu.memory_space<vmem>>, %arg3: memref<1x384xf32, #tpu.memory_space<vmem>>, %arg4: memref<384x256xbf16, #tpu.memory_space<vmem>>, %arg5: memref<1x256xf32, #tpu.memory_space<vmem>>, %arg6: memref<256x128xbf16, #tpu.memory_space<vmem>>, %arg7: memref<1x128xf32, #tpu.memory_space<vmem>>, %arg8: memref<8x128xf32, #tpu.memory_space<vmem>>) attributes {dimension_semantics = [#tpu.dimension_semantics<parallel>], iteration_bounds = array<i64: 3>, scalar_prefetch = 0 : i64, scratch_operands = 0 : i64, tpu.core_type = #tpu.core_type<tc>, window_params = [{transform_indices = @transform_0, window_bounds = array<i64: 8, 128>}, {pipeline_mode = #tpu.pipeline_mode<synchronous>, transform_indices = @transform_1, window_bounds = array<i64: 128, 384>}, {pipeline_mode = #tpu.pipeline_mode<synchronous>, transform_indices = @transform_2, window_bounds = array<i64: 1, 384>}, {pipeline_mode = #tpu.pipeline_mode<synchronous>, transform_indices = @transform_3, window_bounds = array<i64: 384, 256>}, {pipeline_mode = #tpu.pipeline_mode<synchronous>, transform_indices = @transform_4, window_bounds = array<i64: 1, 256>}, {pipeline_mode = #tpu.pipeline_mode<synchronous>, transform_indices = @transform_5, window_bounds = array<i64: 256, 128>}, {pipeline_mode = #tpu.pipeline_mode<synchronous>, transform_indices = @transform_6, window_bounds = array<i64: 1, 128>}, {transform_indices = @transform_7, window_bounds = array<i64: 8, 128>}]} {
    %c0 = arith.constant 0 : index
    %c0_0 = arith.constant 0 : index
    %0 = vector.load %arg1[%c0, %c0_0] : memref<8x128xf32, #tpu.memory_space<vmem>>, vector<8x128xf32>
    %1 = arith.truncf %0 : vector<8x128xf32> to vector<8x128xbf16>
    %c0_1 = arith.constant 0 : index
    %c0_2 = arith.constant 0 : index
    %2 = vector.load %arg2[%c0_1, %c0_2] : memref<128x384xbf16, #tpu.memory_space<vmem>>, vector<128x384xbf16>
    %cst = arith.constant dense<0.000000e+00> : vector<8x384xf32>
    %3 = tpu.matmul %1, %2, %cst {dimension_numbers = #tpu.dot_dimension_numbers<[1], [0], [0], [1], [0, 0, 1, 1], [], []>} : vector<8x128xbf16>, vector<128x384xbf16>, vector<8x384xf32> -> vector<8x384xf32>
    %c0_3 = arith.constant 0 : index
    %c0_4 = arith.constant 0 : index
    %4 = vector.load %arg3[%c0_3, %c0_4] : memref<1x384xf32, #tpu.memory_space<vmem>>, vector<1x384xf32>
    %5 = vector.broadcast %4 : vector<1x384xf32> to vector<8x384xf32>
    %6 = arith.addf %3, %5 : vector<8x384xf32>
    %cst_5 = arith.constant 0.000000e+00 : f32
    %7 = vector.broadcast %cst_5 : f32 to vector<8x384xf32>
    %8 = arith.maximumf %6, %7 : vector<8x384xf32>
    %9 = arith.truncf %8 : vector<8x384xf32> to vector<8x384xbf16>
    %c0_6 = arith.constant 0 : index
    %c0_7 = arith.constant 0 : index
    %10 = vector.load %arg4[%c0_6, %c0_7] : memref<384x256xbf16, #tpu.memory_space<vmem>>, vector<384x256xbf16>
    %cst_8 = arith.constant dense<0.000000e+00> : vector<8x256xf32>
    %11 = tpu.matmul %9, %10, %cst_8 {dimension_numbers = #tpu.dot_dimension_numbers<[1], [0], [0], [1], [0, 0, 1, 1], [], []>} : vector<8x384xbf16>, vector<384x256xbf16>, vector<8x256xf32> -> vector<8x256xf32>
    %c0_9 = arith.constant 0 : index
    %c0_10 = arith.constant 0 : index
    %12 = vector.load %arg5[%c0_9, %c0_10] : memref<1x256xf32, #tpu.memory_space<vmem>>, vector<1x256xf32>
    %13 = vector.broadcast %12 : vector<1x256xf32> to vector<8x256xf32>
    %14 = arith.addf %11, %13 : vector<8x256xf32>
    %cst_11 = arith.constant 0.000000e+00 : f32
    %15 = vector.broadcast %cst_11 : f32 to vector<8x256xf32>
    %16 = arith.maximumf %14, %15 : vector<8x256xf32>
    %17 = arith.truncf %16 : vector<8x256xf32> to vector<8x256xbf16>
    %c0_12 = arith.constant 0 : index
    %c0_13 = arith.constant 0 : index
    %18 = vector.load %arg6[%c0_12, %c0_13] : memref<256x128xbf16, #tpu.memory_space<vmem>>, vector<256x128xbf16>
    %cst_14 = arith.constant dense<0.000000e+00> : vector<8x128xf32>
    %19 = tpu.matmul %17, %18, %cst_14 {dimension_numbers = #tpu.dot_dimension_numbers<[1], [0], [0], [1], [0, 0, 1, 1], [], []>} : vector<8x256xbf16>, vector<256x128xbf16>, vector<8x128xf32> -> vector<8x128xf32>
    %c0_15 = arith.constant 0 : index
    %c0_16 = arith.constant 0 : index
    %20 = vector.load %arg7[%c0_15, %c0_16] : memref<1x128xf32, #tpu.memory_space<vmem>>, vector<1x128xf32>
    %21 = vector.broadcast %20 : vector<1x128xf32> to vector<8x128xf32>
    %22 = arith.addf %19, %21 : vector<8x128xf32>
    %c0_17 = arith.constant 0 : index
    %c0_18 = arith.constant 0 : index
    %23 = vector.load %arg8[%c0_17, %c0_18] : memref<8x128xf32, #tpu.memory_space<vmem>>, vector<8x128xf32>
    tpu.vector_store %arg8[%c0_17, %c0_18], %22 {strides = array<i32>} : memref<8x128xf32, #tpu.memory_space<vmem>>, vector<8x128xf32>,
    return
  }
  func.func @transform_0(%arg0: i32) -> (i32, i32) {
    %c0_i32 = arith.constant 0 : i32
    %c0_i32_0 = arith.constant 0 : i32
    return %arg0, %c0_i32 : i32, i32
  }
  func.func @transform_1(%arg0: i32) -> (i32, i32) {
    %c0_i32 = arith.constant 0 : i32
    %c0_i32_0 = arith.constant 0 : i32
    %c0_i32_1 = arith.constant 0 : i32
    return %c0_i32, %c0_i32_0 : i32, i32
  }
  func.func @transform_2(%arg0: i32) -> (i32, i32) {
    %c0_i32 = arith.constant 0 : i32
    %c0_i32_0 = arith.constant 0 : i32
    %c0_i32_1 = arith.constant 0 : i32
    return %c0_i32, %c0_i32_0 : i32, i32
  }
  func.func @transform_3(%arg0: i32) -> (i32, i32) {
    %c0_i32 = arith.constant 0 : i32
    %c0_i32_0 = arith.constant 0 : i32
    %c0_i32_1 = arith.constant 0 : i32
    return %c0_i32, %c0_i32_0 : i32, i32
  }
  func.func @transform_4(%arg0: i32) -> (i32, i32) {
    %c0_i32 = arith.constant 0 : i32
    %c0_i32_0 = arith.constant 0 : i32
    %c0_i32_1 = arith.constant 0 : i32
    return %c0_i32, %c0_i32_0 : i32, i32
  }
  func.func @transform_5(%arg0: i32) -> (i32, i32) {
    %c0_i32 = arith.constant 0 : i32
    %c0_i32_0 = arith.constant 0 : i32
    %c0_i32_1 = arith.constant 0 : i32
    return %c0_i32, %c0_i32_0 : i32, i32
  }
  func.func @transform_6(%arg0: i32) -> (i32, i32) {
    %c0_i32 = arith.constant 0 : i32
    %c0_i32_0 = arith.constant 0 : i32
    %c0_i32_1 = arith.constant 0 : i32
    return %c0_i32, %c0_i32_0 : i32, i32
  }
  func.func @transform_7(%arg0: i32) -> (i32, i32) {
    %c0_i32 = arith.constant 0 : i32
    %c0_i32_0 = arith.constant 0 : i32
    return %arg0, %c0_i32 : i32, i32
  }
}

</mosaic_0001>

<bundles_post_ra>
// kernel: ann_forward.4
= control target key start
LH: loop header
LB: loop body
LE: loop exit
PB: predicated region body
PF: predicated region fallthrough
CT: control target
= control target key end

     0   :  { %s1238_s9 = smov 0   ;;  %s1466_s0 = inlined_call_operand.<no memory space> [shape: s32[1], index: 0, kind: input, shape index: {}]   ;;  %s1467_s1 = inlined_call_operand.<no memory space> [shape: f32[1], index: 1, kind: input, shape index: {}]   ;;  %s1468_s2 = inlined_call_operand.vmem [shape: f32[24,128], index: 2, kind: input, shape index: {}]   ;;  %s1469_s3 = inlined_call_operand.vmem [shape: bf16[128,512], index: 3, kind: input, shape index: {}]   ;;  %s1470_s4 = inlined_call_operand.vmem [shape: f32[1,512], index: 4, kind: input, shape index: {}]   ;;  %s1471_s5 = inlined_call_operand.vmem [shape: bf16[512,128], index: 5, kind: input, shape index: {}]   ;;  %s1472_s6 = inlined_call_operand.vmem [shape: f32[1,128], index: 6, kind: input, shape index: {}]   ;;  %s1473_s7 = inlined_call_operand.vmem [shape: f32[1,128], index: 7, kind: output, shape index: {0}]   ;;  %s1474_s8 = inlined_call_operand.vmem [shape: f32[1,128], index: 8, kind: output, shape index: {1}]  }
   0x1   :  { %14 = sst [smem:[#allocation4]] %s1466_s0 }
   0x2   :  { %15 = sst [smem:[#allocation5]] %s1467_s1 }
   0x3 LB: > { %s1244_s10 = sadd.s32 4294967295, %s1183_s9   ;;  %p967_p0 = scmp.ge.s32.totalorder %s1183_s9, 1  ;;  %s1183_s9 = sphi %s1238_s9, %s21_s9  }
   0x4   : > { %p208_p1 = scmp.lt.s32.totalorder %s1183_s9, 4 }
   0x6   : > { %p209_p2 = pnand %p967_p0, %p208_p1 }
   0x7   : > { %p232_p3 = scmp.lt.s32.totalorder (!%p209_p2), %s1244_s10, 2  ;;  %p969_p4 = scmp.ne.s32.totalorder (!%p209_p2), %s1244_s10, 0 }
   0x8   : > { %212 = sbr.rel (%p209_p2) target bundleno = 547 (0x223), region = 40 }
   0xd   : > { %s233_s0 = scalar_select %p232_p3, %s1244_s10, 2 }
   0xe   : > { %240 = sbr.rel (%p969_p4) target bundleno = 21 (0x15), region = 44 }
   0xf   : > { %s968_s1 = sshll.u32 %s233_s0, 3 }
  0x10   : > { %s1253_s13 = scalar_lea.vmem %s1468_s2, %s968_s1 }
  0x13   : > { %v1185_v0 = vmov 0.0  }
  0x14   : > { %241 = vst [vmem:[#allocation2] sm:$0x1] %v1185_v0 }
  0x15 PF: > { %v1095_v1 = vld [vmem:[%s1469_s3 + $0xe4] ss:$16 sps:$4 sm:$0xff]   ;;  %v1097_v2 = vld [vmem:[%s1469_s3 + $0xec] ss:$16 sps:$4 sm:$0xff]   ;;  %v1186_v3 = vmov 0   ;;  %s897_s15 = sld [smem:[#allocation4]] }
  0x16   : > { %490 = vmatprep.mubr.bf16.mxu0 %v1186_v3  ;;  %531 = vmatprep.mubr.bf16.mxu1 %v1186_v3  ;;  %v1099_v4 = vld [vmem:[%s1469_s3 + $0xe0] ss:$16 sps:$4 sm:$0xff]   ;;  %v1100_v5 = vld [vmem:[%s1469_s3 + $0xe8] ss:$16 sps:$4 sm:$0xff]   ;;  %v1101_v6 = vld [vmem:[%s1469_s3 + $0xc4] ss:$16 sps:$4 sm:$0xff]  }
  0x17   : > { %458 = vmatprep.subr.bf16.mxu0 %v1095_v1  ;;  %499 = vmatprep.subr.bf16.mxu1 %v1097_v2  ;;  %v1103_v7 = vld [vmem:[%s1469_s3 + $0xcc] ss:$16 sps:$4 sm:$0xff]   ;;  %v1105_v8 = vld [vmem:[%s1469_s3 + $0xc0] ss:$16 sps:$4 sm:$0xff]   ;;  %v1106_v9 = vld [vmem:[%s1469_s3 + $0xc8] ss:$16 sps:$4 sm:$0xff]  }
  0x18   : > { %459 = vmatpush1.bf16.msra.mxu0 %v1099_v4  ;;  %500 = vmatpush1.bf16.msra.mxu1 %v1100_v5  ;;  %v1107_v10 = vld [vmem:[%s1469_s3 + $0xa4] ss:$16 sps:$4 sm:$0xff]   ;;  %v1109_v11 = vld [vmem:[%s1469_s3 + $0xac] ss:$16 sps:$4 sm:$0xff]   ;;  %v1111_v12 = vld [vmem:[%s1469_s3 + $0xa0] ss:$16 sps:$4 sm:$0xff]   ;;  %v278_v4 = vlaneseq }
  0x19   : > { %460 = vmatprep.subr.bf16.mxu0 %v1101_v6  ;;  %501 = vmatprep.subr.bf16.mxu1 %v1103_v7  ;;  %v1112_v13 = vld [vmem:[%s1469_s3 + $0xa8] ss:$16 sps:$4 sm:$0xff]   ;;  %v1113_v14 = vld [vmem:[%s1469_s3 + $0x84] ss:$16 sps:$4 sm:$0xff]   ;;  %v1115_v15 = vld [vmem:[%s1469_s3 + $0x8c] ss:$16 sps:$4 sm:$0xff]  }
  0x1a   : > { %v1117_v16 = vld [vmem:[%s1469_s3 + $0x80] ss:$16 sps:$4 sm:$0xff]   ;;  %v1118_v17 = vld [vmem:[%s1469_s3 + $0x88] ss:$16 sps:$4 sm:$0xff]   ;;  %v1119_v18 = vld [vmem:[%s1469_s3 + $0x64] ss:$16 sps:$4 sm:$0xff]  }
  0x1b   : > { %v1121_v19 = vld [vmem:[%s1469_s3 + $0x6c] ss:$16 sps:$4 sm:$0xff]   ;;  %v1123_v20 = vld [vmem:[%s1469_s3 + $0x60] ss:$16 sps:$4 sm:$0xff]   ;;  %v1124_v21 = vld [vmem:[%s1469_s3 + $0x68] ss:$16 sps:$4 sm:$0xff]  }
  0x1c   : > { %461 = vmatpush1.bf16.msra.mxu0 %v1105_v8  ;;  %502 = vmatpush1.bf16.msra.mxu1 %v1106_v9  ;;  %v1125_v22 = vld [vmem:[%s1469_s3 + $0x44] ss:$16 sps:$4 sm:$0xff]   ;;  %v1127_v23 = vld [vmem:[%s1469_s3 + $0x4c] ss:$16 sps:$4 sm:$0xff]   ;;  %v1129_v24 = vld [vmem:[%s1469_s3 + $0x40] ss:$16 sps:$4 sm:$0xff]  }
  0x1d   : > { %462 = vmatprep.subr.bf16.mxu0 %v1107_v10  ;;  %503 = vmatprep.subr.bf16.mxu1 %v1109_v11  ;;  %v1130_v25 = vld [vmem:[%s1469_s3 + $0x48] ss:$16 sps:$4 sm:$0xff]   ;;  %v1131_v26 = vld [vmem:[%s1469_s3 + $0x24] ss:$16 sps:$4 sm:$0xff]   ;;  %v1133_v27 = vld [vmem:[%s1469_s3 + $0x2c] ss:$16 sps:$4 sm:$0xff]  }
  0x1e   : > { %v1135_v28 = vld [vmem:[%s1469_s3 + $0x20] ss:$16 sps:$4 sm:$0xff]   ;;  %v1136_v29 = vld [vmem:[%s1469_s3 + $0x28] ss:$16 sps:$4 sm:$0xff]   ;;  %v1137_v30 = vld [vmem:[%s1469_s3 + $0x4] ss:$16 sps:$4 sm:$0xff]  }
  0x1f   : > { %v1139_v31 = vld [vmem:[%s1469_s3 + $0xc] ss:$16 sps:$4 sm:$0xff]   ;;  %v1141_v32 = vld [vmem:[%s1469_s3] ss:$16 sps:$4 sm:$0xff]   ;;  %v1142_v33 = vld [vmem:[%s1469_s3 + $0x8] ss:$16 sps:$4 sm:$0xff]  }
  0x20   : > { %463 = vmatpush1.bf16.msra.mxu0 %v1111_v12  ;;  %504 = vmatpush1.bf16.msra.mxu1 %v1112_v13  ;;  %v242_v34 = vld [vmem:[%s1253_s13] sm:$0xff]  ;;  %v1143_v35 = vld [vmem:[%s1471_s5 + $0x78] sm:$0xff]   ;;  %v1147_v40 = vld [vmem:[%s1471_s5 + $0x70] sm:$0xff]   ;;  %v279_v5 = vshrl.u32 %v278_v4, 7  ;;  %s1035_s16 = sshll.u32 %s1244_s10, 3  ;;  %p1036_p5 = scmp.ne.s32.totalorder %s1244_s10, 2 }
  0x21   : > { %464 = vmatprep.subr.bf16.mxu0 %v1113_v14  ;;  %505 = vmatprep.subr.bf16.mxu1 %v1115_v15  ;;  %v1144_v36 = vld [vmem:[%s1471_s5 + $0xf8] sm:$0xff]   ;;  %v243_v38 = vpack.c.bf16 %v242_v34, %v242_v34  ;;  %v1148_v41 = vld [vmem:[%s1471_s5 + $0xf0] sm:$0xff]   ;;  %v1151_v44 = vld [vmem:[%s1471_s5 + $0x68] sm:$0xff]   ;;  %s916_s19 = sld [smem:[#allocation4]] (!%p1036_p5) }
  0x22   : > { %v1145_v37 = vld [vmem:[%s1471_s5 + $0x38] sm:$0xff]   ;;  %v1149_v42 = vld [vmem:[%s1471_s5 + $0x30] sm:$0xff]   ;;  %v1152_v45 = vld [vmem:[%s1471_s5 + $0xe8] sm:$0xff]   ;;  %v280_v6 = vsub.s32 0, %v279_v5  ;;  %v288_v7 = vsub.s32 2, %v279_v5  ;;  %v284_v9 = vsub.s32 1, %v279_v5 }
  0x23   : > { %v1146_v39 = vld [vmem:[%s1471_s5 + $0xb8] sm:$0xff]   ;;  %v1150_v43 = vld [vmem:[%s1471_s5 + $0xb0] sm:$0xff]   ;;  %v1153_v46 = vld [vmem:[%s1471_s5 + $0x28] sm:$0xff]   ;;  %v292_v10 = vsub.s32 3, %v279_v5  ;;  %s925_s21 = sld [smem:[#allocation5]] (!%p1036_p5) }
  0x24   : > { %465 = vmatpush1.bf16.msra.mxu0 %v1117_v16  ;;  %506 = vmatpush1.bf16.msra.mxu1 %v1118_v17  ;;  %v1154_v47 = vld [vmem:[%s1471_s5 + $0xa8] sm:$0xff]   ;;  %v1155_v48 = vld [vmem:[%s1471_s5 + $0x60] sm:$0xff]   ;;  %v1159_v52 = vld [vmem:[%s1471_s5 + $0x58] sm:$0xff]  }
  0x25   : > { %466 = vmatprep.subr.bf16.mxu0 %v1119_v18  ;;  %507 = vmatprep.subr.bf16.mxu1 %v1121_v19  ;;  %v1156_v49 = vld [vmem:[%s1471_s5 + $0xe0] sm:$0xff]   ;;  %v1160_v53 = vld [vmem:[%s1471_s5 + $0xd8] sm:$0xff]   ;;  %v1163_v56 = vld [vmem:[%s1471_s5 + $0x50] sm:$0xff]  }
  0x26   : > { %v1157_v50 = vld [vmem:[%s1471_s5 + $0x20] sm:$0xff]   ;;  %v1161_v54 = vld [vmem:[%s1471_s5 + $0x18] sm:$0xff]   ;;  %v1164_v57 = vld [vmem:[%s1471_s5 + $0xd0] sm:$0xff]  }
  0x27   : > { %v1158_v51 = vld [vmem:[%s1471_s5 + $0xa0] sm:$0xff]   ;;  %v1162_v55 = vld [vmem:[%s1471_s5 + $0x98] sm:$0xff]   ;;  %v1165_v58 = vld [vmem:[%s1471_s5 + $0x10] sm:$0xff]   ;;  %s917_s20 = scvt.s32.f32 (!%p1036_p5), %s916_s19 }
  0x28   : > { %467 = vmatpush1.bf16.msra.mxu0 %v1123_v20  ;;  %508 = vmatpush1.bf16.msra.mxu1 %v1124_v21  ;;  %v1166_v59 = vld [vmem:[%s1471_s5 + $0x90] sm:$0xff]   ;;  %v1167_v60 = vld [vmem:[%s1471_s5 + $0x48] sm:$0xff]   ;;  %v1171_v0 = vld [vmem:[%s1471_s5 + $0x40] sm:$0xff]  }
  0x29   : > { %468 = vmatprep.subr.bf16.mxu0 %v1125_v22  ;;  %509 = vmatprep.subr.bf16.mxu1 %v1127_v23  ;;  %v1168_v61 = vld [vmem:[%s1471_s5 + $0xc8] sm:$0xff]   ;;  %v1172_v1 = vld [vmem:[%s1471_s5 + $0xc0] sm:$0xff]  }
  0x2a   : > { %v1169_v62 = vld [vmem:[%s1471_s5 + $0x8] sm:$0xff]   ;;  %v1173_v2 = vld [vmem:[%s1471_s5] sm:$0xff]  }
  0x2b   : > { %v1170_v63 = vld [vmem:[%s1471_s5 + $0x88] sm:$0xff]   ;;  %v1174_v3 = vld [vmem:[%s1471_s5 + $0x80] sm:$0xff]  }
  0x2c   : > { %469 = vmatpush1.bf16.msra.mxu0 %v1129_v24  ;;  %510 = vmatpush1.bf16.msra.mxu1 %v1130_v25  ;;  %v276_v8 = vld [vmem:[%s1470_s4] sm:$0xf] }
  0x2d   : > { %470 = vmatprep.subr.bf16.mxu0 %v1131_v26  ;;  %511 = vmatprep.subr.bf16.mxu1 %v1133_v27  ;;  %v281_v11 = vrot.slane %v276_v8, %v280_v6  ;;  %v289_v12 = vrot.slane %v276_v8, %v288_v7  ;;  %v285_v13 = vrot.slane %v276_v8, %v284_v9 }
  0x2e   : > { %v293_v14 = vrot.slane %v276_v8, %v292_v10 }
  0x30   : > { %471 = vmatpush1.bf16.msra.mxu0 %v1135_v28  ;;  %512 = vmatpush1.bf16.msra.mxu1 %v1136_v29 }
  0x31   : > { %472 = vmatprep.subr.bf16.mxu0 %v1137_v30  ;;  %513 = vmatprep.subr.bf16.mxu1 %v1139_v31 }
  0x34   : > { %473 = vmatpush1.bf16.msra.mxu0 %v1141_v32  ;;  %514 = vmatpush1.bf16.msra.mxu1 %v1142_v33 }
  0x35   : > { %1039 = vmatprep.subr.bf16.mxu0 %v1143_v35  ;;  %1061 = vmatprep.subr.bf16.mxu1 %v1144_v36 }
  0x37   : > { %491 = vmatmul.mubr.bf16.vlgmr.msra.gmra.mxu0 %v243_v38  ;;  %532 = vmatmul.mubr.bf16.vlgmr.msra.gmra.mxu1 %v243_v38  ;;  %v1002_v38 = vld [vmem:[%s1472_s6] ss:$0 sm:$0xff] }
  0x38   : > { %1040 = vmatpush3.bf16.msra.mxu0 %v1145_v37  ;;  %1062 = vmatpush3.bf16.msra.mxu1 %v1146_v39  ;;  %v895_v37 = vstv %s1035_s16 }
  0x39   : > { %1041 = vmatprep.subr.bf16.mxu0 %v1147_v40  ;;  %1063 = vmatprep.subr.bf16.mxu1 %v1148_v41 }
  0x3c   : > { %1042 = vmatpush3.bf16.msra.mxu0 %v1149_v42  ;;  %1064 = vmatpush3.bf16.msra.mxu1 %v1150_v43  ;;  %v896_v42 = vadd.s32 %v895_v37, %v279_v5 }
  0x3d   : > { %1043 = vmatprep.subr.bf16.mxu0 %v1151_v44  ;;  %1065 = vmatprep.subr.bf16.mxu1 %v1152_v45 }
  0x40   : > { %1044 = vmatpush3.bf16.msra.mxu0 %v1153_v46  ;;  %1066 = vmatpush3.bf16.msra.mxu1 %v1154_v47  ;;  %v898_v47 = vstv %s897_s15 }
  0x41   : > { %1045 = vmatprep.subr.bf16.mxu0 %v1155_v48  ;;  %1067 = vmatprep.subr.bf16.mxu1 %v1156_v49  ;;  %vm899_vm0 = vcmp.lt.s32.totalorder %v896_v42, %v898_v47 }
  0x44   : > { %1046 = vmatpush3.bf16.msra.mxu0 %v1157_v50  ;;  %1068 = vmatpush3.bf16.msra.mxu1 %v1158_v51 }
  0x45   : > { %1047 = vmatprep.subr.bf16.mxu0 %v1159_v52  ;;  %1069 = vmatprep.subr.bf16.mxu1 %v1160_v53 }
  0x48   : > { %1048 = vmatpush3.bf16.msra.mxu0 %v1161_v54  ;;  %1070 = vmatpush3.bf16.msra.mxu1 %v1162_v55 }
  0x49   : > { %1049 = vmatprep.subr.bf16.mxu0 %v1163_v56  ;;  %1071 = vmatprep.subr.bf16.mxu1 %v1164_v57 }
  0x4c   : > { %1050 = vmatpush3.bf16.msra.mxu0 %v1165_v58  ;;  %1072 = vmatpush3.bf16.msra.mxu1 %v1166_v59  ;;  %v903_v58 = vld [vmem:[#allocation2] sm:$0x1] }
  0x4d   : > { %1051 = vmatprep.subr.bf16.mxu0 %v1167_v60  ;;  %1073 = vmatprep.subr.bf16.mxu1 %v1168_v61 }
  0x50   : > { %1052 = vmatpush3.bf16.msra.mxu0 %v1169_v62  ;;  %1074 = vmatpush3.bf16.msra.mxu1 %v1170_v63 }
  0x51   : > { %1053 = vmatprep.subr.bf16.mxu0 %v1171_v0  ;;  %1075 = vmatprep.subr.bf16.mxu1 %v1172_v1 }
  0x54   : > { %1054 = vmatpush3.bf16.msra.mxu0 %v1173_v2  ;;  %1076 = vmatpush3.bf16.msra.mxu1 %v1174_v3 }
  0xf7   : > { %v492_v15 = vpop.f32.mrf.mxu0  ;;  %v533_v16 = vpop.f32.mrf.mxu1 }
  0xf8   : > { %v493_v17 = vadd.f32 %v492_v15, %v281_v11  ;;  %v534_v18 = vadd.f32 %v533_v16, %v289_v12 }
  0xf9   : > { %v494_v19 = vpop.f32.mrf.mxu0  ;;  %v535_v20 = vpop.f32.mrf.mxu1 }
  0xfa   : > { %v542_v21 = vmax.f32 %v534_v18, 0.0  ;;  %v495_v22 = vadd.f32 %v494_v19, %v285_v13  ;;  %v536_v23 = vadd.f32 %v535_v20, %v293_v14  ;;  %v540_v24 = vmax.f32 %v493_v17, 0.0 }
  0xfb   : > { %v496_v25 = vpop.f32.mrf.mxu0  ;;  %v537_v26 = vpop.f32.mrf.mxu1 }
  0xfc   : > { %v541_v27 = vmax.f32 %v495_v22, 0.0  ;;  %v543_v28 = vmax.f32 %v536_v23, 0.0  ;;  %v546_v29 = vpack.c.bf16 %v542_v21, %v542_v21  ;;  %v544_v34 = vpack.c.bf16 %v540_v24, %v540_v24 }
  0xfd   : > { %v497_v30 = vpop.f32.mrf.mxu0  ;;  %v538_v31 = vpop.f32.mrf.mxu1 }
  0xfe   : > { %v545_v32 = vpack.c.bf16 %v541_v27, %v541_v27  ;;  %v547_v33 = vpack.c.bf16 %v543_v28, %v543_v28 }
 0x100   : > { %843 = vmatprep.mubr.bf16.mxu0 %v545_v32  ;;  %883 = vmatprep.mubr.bf16.mxu1 %v547_v33 }
 0x101   : > { %844 = vmatmul.mubr.bf16.vlgmr.msra.gmra.mxu0 %v544_v34  ;;  %884 = vmatmul.mubr.bf16.vlgmr.msra.gmra.mxu1 %v546_v29 }
 0x1c1   : > { %v1055_v35 = vpop.f32.mrf.mxu0  ;;  %v1077_v36 = vpop.f32.mrf.mxu1 }
 0x1c3   : > { %v1056_v39 = vpop.f32.mrf.mxu0  ;;  %v1078_v40 = vpop.f32.mrf.mxu1 }
 0x1c4   : > { %v1057_v41 = vadd.f32 %v1056_v39, %v1055_v35  ;;  %v1079_v46 = vadd.f32 %v1078_v40, %v1077_v36 }
 0x1c5   : > { %v1058_v43 = vpop.f32.mrf.mxu0  ;;  %v1080_v44 = vpop.f32.mrf.mxu1 }
 0x1c6   : > { %v846_v45 = vadd.f32 %v1057_v41, %v1002_v38 }
 0x1c7   : > { %v1059_v48 = vpop.f32.mrf.mxu0  ;;  %v1081_v49 = vpop.f32.mrf.mxu1 }
 0x1c8   : > { %v886_v50 = vadd.f32 %v1079_v46, %v846_v45 }
 0x1ca   : > { %v891_v51 = vand.u32 2147483647, %v886_v50 }
 0x1cc   : > { %v902_v52 = vsel %vm899_vm0, %v891_v51, 0.0 }
 0x1cd   : > { %v904_v53 = vrot.slane %v902_v52, 4 }
 0x1cf   : > { %v905_v54 = vadd.f32 %v904_v53, %v902_v52 }
 0x1d1   : > { %v906_v55 = vrot.slane %v905_v54, 2 }
 0x1d3   : > { %v907_v56 = vadd.f32 %v906_v55, %v905_v54 }
 0x1d5   : > { %v908_v57 = vrot.slane %v907_v56, 1 }
 0x1d7   : > { %v909_v59 = vadd.f32 %v908_v57, %v907_v56  ;;  %915 = sbr.rel (%p1036_p5) target bundleno = 547 (0x223), region = 48 }
 0x1d9   : > { %v910_v60 = vadd.f32 %v909_v59, %v903_v58 }
 0x1db   : > { %911 = vst [vmem:[#allocation2] sm:$0x1] %v910_v60 }
 0x1dc   : > { %v918_v61 = vstv %s917_s20  ;;  %v926_v1 = vstv %s925_s21 }
 0x1dd   : > { %1175 = vrcp.f32 %v918_v61 }
 0x1e2   : > { %v921_v63 = vld [vmem:[#allocation2] sm:$0x1] }
 0x1ea   : > { %v1176_v62 = vpop.eup %1175 }
 0x1eb   : > { %1083 = vpush %v1176_v62 }
 0x21c   : > { %s1084_s22 = spop %1083 }
 0x21d   : > { %v922_v0 = vstv %s1084_s22 }
 0x21e   : > { %v923_v2 = vmul.f32 %v922_v0, %v921_v63 }
 0x220   : > { %924 = vst [vmem:[%s1473_s7] sm:$0x1] %v923_v2  ;;  %vm927_vm1 = vcmp.lt.f32.partialorder %v923_v2, %v926_v1 }
 0x221   : > { %v928_v3 = vsel %vm927_vm1, 0.0, %v923_v2 }
 0x222   : > { %929 = vst [vmem:[%s1474_s8] sm:$0x1] %v928_v3 }
 0x223 PF: > { %s21_s9 = sadd.s32 1, %s1183_s9  }
 0x224   : > { %p18_p6 = scmp.ge.s32.totalorder %s21_s9, 5  }
 0x226   :  { %20 = sbr.rel (!%p18_p6) target bundleno = 3 (0x3), region = 82 }

// kernel: ann_forward.5
= control target key start
LH: loop header
LB: loop body
LE: loop exit
PB: predicated region body
PF: predicated region fallthrough
CT: control target
= control target key end

     0   :  { %s781_s20 = smov 0   ;;  %s917_s0 = inlined_call_operand.<no memory space> [shape: s32[1], index: 0, kind: input, shape index: {}]   ;;  %s918_s1 = inlined_call_operand.vmem [shape: f32[24,128], index: 1, kind: input, shape index: {}]   ;;  %s919_s2 = inlined_call_operand.vmem [shape: bf16[128,384], index: 2, kind: input, shape index: {}]   ;;  %s920_s3 = inlined_call_operand.vmem [shape: f32[1,384], index: 3, kind: input, shape index: {}]   ;;  %s921_s4 = inlined_call_operand.vmem [shape: f32[1,384], index: 4, kind: output, shape index: {0}]   ;;  %s922_s5 = inlined_call_operand.vmem [shape: f32[1,384], index: 5, kind: output, shape index: {1}]  }
   0x1   :  { %11 = sst [smem:[#allocation5]] %s917_s0 }
   0x2 LB: > { %s787_s21 = sadd.s32 4294967295, %s741_s20   ;;  %p626_p0 = scmp.ge.s32.totalorder %s741_s20, 1  ;;  %s741_s20 = sphi %s781_s20, %s17_s20  }
   0x3   : > { %p156_p1 = scmp.lt.s32.totalorder %s741_s20, 4 }
   0x5   : > { %p157_p2 = pnand %p626_p0, %p156_p1 }
   0x6   : > { %p176_p3 = scmp.lt.s32.totalorder (!%p157_p2), %s787_s21, 2  ;;  %p628_p4 = scmp.ne.s32.totalorder (!%p157_p2), %s787_s21, 0 }
   0x7   : > { %160 = sbr.rel (%p157_p2) target bundleno = 356 (0x164), region = 32 }
   0xc   : > { %s177_s0 = scalar_select %p176_p3, %s787_s21, 2 }
   0xd   : > { %184 = sbr.rel (%p628_p4) target bundleno = 22 (0x16), region = 36 }
   0xe   : > { %s627_s22 = sshll.u32 %s177_s0, 3 }
   0xf   : > { %s796_s25 = scalar_lea.vmem %s918_s1, %s627_s22 }
  0x12   : > { %v185_v0 = vlaneseq  ;;  %v743_v1 = vmov 0.0  }
  0x14   : > { %vm187_vm0 = vcmp.lt.s32.totalorder %v185_v0, 384 }
  0x15   : > { %189 = vst.msk [vmem:[#allocation2] sm:$0x7] %vm187_vm0, %v743_v1  ;;  %190 = vst.msk [vmem:[#allocation3] sm:$0x7] %vm187_vm0, %v743_v1 }
  0x16 PF: > { %v701_v2 = vld [vmem:[%s919_s2 + $0xac] ss:$12 sps:$4 sm:$0xff]   ;;  %v744_v3 = vmov 0.0   ;;  %v703_v4 = vld [vmem:[%s919_s2 + $0xb0] ss:$12 sps:$4 sm:$0xff]   ;;  %vm745_vm1 = vmmov 0   ;;  %v227_v30 = vlaneseq }
  0x17   : > { %666 = vmatprep.subr.bf16.mxu1 %v744_v3  ;;  %682 = vmatprep.mubr.msk.bf16.mxu1 %vm745_vm1, %v744_v3  ;;  %v704_v5 = vld [vmem:[%s919_s2 + $0xa8] ss:$12 sps:$4 sm:$0xff]   ;;  %v746_v7 = vmov 0   ;;  %v707_v8 = vld [vmem:[%s919_s2 + $0x98] ss:$12 sps:$4 sm:$0xff]   ;;  %s459_s28 = sld [smem:[#allocation5]] }
  0x18   : > { %370 = vmatprep.subr.bf16.mxu0 %v701_v2  ;;  %667 = vmatpush3.bf16.msra.mxu1 %v703_v4  ;;  %v705_v6 = vld [vmem:[%s919_s2 + $0x94] ss:$12 sps:$4 sm:$0xff]   ;;  %v708_v9 = vld [vmem:[%s919_s2 + $0x90] ss:$12 sps:$4 sm:$0xff]   ;;  %v712_v12 = vld [vmem:[%s919_s2 + $0x78] ss:$12 sps:$4 sm:$0xff]  }
  0x19   : > { %402 = vmatprep.mubr.bf16.mxu0 %v746_v7  ;;  %371 = vmatpush1.bf16.msra.mxu0 %v704_v5  ;;  %v709_v10 = vld [vmem:[%s919_s2 + $0x7c] ss:$12 sps:$4 sm:$0xff]   ;;  %v711_v11 = vld [vmem:[%s919_s2 + $0x80] ss:$12 sps:$4 sm:$0xff]   ;;  %v713_v13 = vld [vmem:[%s919_s2 + $0x64] ss:$12 sps:$4 sm:$0xff]  }
  0x1a   : > { %668 = vmatprep.subr.bf16.mxu1 %v744_v3  ;;  %372 = vmatprep.subr.bf16.mxu0 %v705_v6  ;;  %v715_v14 = vld [vmem:[%s919_s2 + $0x68] ss:$12 sps:$4 sm:$0xff]   ;;  %v716_v15 = vld [vmem:[%s919_s2 + $0x60] ss:$12 sps:$4 sm:$0xff]   ;;  %v719_v17 = vld [vmem:[%s919_s2 + $0x50] ss:$12 sps:$4 sm:$0xff]  }
  0x1b   : > { %v717_v16 = vld [vmem:[%s919_s2 + $0x4c] ss:$12 sps:$4 sm:$0xff]   ;;  %v720_v18 = vld [vmem:[%s919_s2 + $0x48] ss:$12 sps:$4 sm:$0xff]   ;;  %v724_v21 = vld [vmem:[%s919_s2 + $0x30] ss:$12 sps:$4 sm:$0xff]  }
  0x1c   : > { %669 = vmatpush3.bf16.msra.mxu1 %v707_v8  ;;  %v721_v19 = vld [vmem:[%s919_s2 + $0x34] ss:$12 sps:$4 sm:$0xff]   ;;  %v723_v20 = vld [vmem:[%s919_s2 + $0x38] ss:$12 sps:$4 sm:$0xff]   ;;  %v725_v22 = vld [vmem:[%s919_s2 + $0x1c] ss:$12 sps:$4 sm:$0xff]  }
  0x1d   : > { %373 = vmatpush1.bf16.msra.mxu0 %v708_v9  ;;  %670 = vmatprep.subr.bf16.mxu1 %v744_v3  ;;  %v727_v23 = vld [vmem:[%s919_s2 + $0x20] ss:$12 sps:$4 sm:$0xff]   ;;  %v728_v24 = vld [vmem:[%s919_s2 + $0x18] ss:$12 sps:$4 sm:$0xff]   ;;  %v731_v26 = vld [vmem:[%s919_s2 + $0x8] ss:$12 sps:$4 sm:$0xff]   ;;  %v460_v40 = vstv %s459_s28 }
  0x1e   : > { %374 = vmatprep.subr.bf16.mxu0 %v709_v10  ;;  %v729_v25 = vld [vmem:[%s919_s2 + $0x4] ss:$12 sps:$4 sm:$0xff]   ;;  %v732_v28 = vld [vmem:[%s919_s2] ss:$12 sps:$4 sm:$0xff]   ;;  %v873_v31 = vshrl.u32 %v227_v30, 7  ;;  %s653_s29 = sshll.u32 %s787_s21, 3 }
  0x1f   : > { %v191_v27 = vld [vmem:[%s796_s25] sm:$0xff]  ;;  %v457_v35 = vstv %s653_s29  ;;  %v747_v7 = vmov 1966171168   ;;  %vm895_vm3 = vcmp.lt.s32.totalorder %v227_v30, 384  ;;  %p654_p5 = scmp.ne.s32.totalorder %s787_s21, 2 }
  0x20   : > { %671 = vmatpush3.bf16.msra.mxu1 %v711_v11  ;;  %v192_v29 = vpack.c.bf16 %v191_v27, %v191_v27  ;;  %v237_v32 = vsub.s32 2, %v873_v31  ;;  %v225_v33 = vld [vmem:[%s920_s3] sm:$0x7]  ;;  %v229_v34 = vsub.s32 0, %v873_v31  ;;  %v233_v36 = vsub.s32 1, %v873_v31  ;;  %s574_s6 = sld [smem:[#allocation5]] (!%p654_p5) }
  0x21   : > { %375 = vmatpush1.bf16.msra.mxu0 %v712_v12  ;;  %672 = vmatprep.subr.bf16.mxu1 %v744_v3  ;;  %v458_v38 = vadd.s32 %v457_v35, %v873_v31  ;;  %v491_v8 = vunpack.c.l.s4 %v747_v7 }
  0x22   : > { %376 = vmatprep.subr.bf16.mxu0 %v713_v13  ;;  %v238_v37 = vrot.slane %v225_v33, %v237_v32  ;;  %v230_v39 = vrot.slane %v225_v33, %v229_v34  ;;  %v234_v42 = vrot.slane %v225_v33, %v233_v36 }
  0x23   : > { %vm883_vm2 = vcmp.lt.s32.totalorder %v458_v38, %v460_v40 }
  0x24   : > { %673 = vmatpush3.bf16.msra.mxu1 %v715_v14 }
  0x25   : > { %377 = vmatpush1.bf16.msra.mxu0 %v716_v15  ;;  %674 = vmatprep.subr.bf16.mxu1 %v744_v3 }
  0x26   : > { %378 = vmatprep.subr.bf16.mxu0 %v717_v16  ;;  %s575_s7 = scvt.s32.f32 (!%p654_p5), %s574_s6 }
  0x28   : > { %675 = vmatpush3.bf16.msra.mxu1 %v719_v17 }
  0x29   : > { %379 = vmatpush1.bf16.msra.mxu0 %v720_v18  ;;  %676 = vmatprep.subr.bf16.mxu1 %v744_v3 }
  0x2a   : > { %380 = vmatprep.subr.bf16.mxu0 %v721_v19 }
  0x2c   : > { %677 = vmatpush3.bf16.msra.mxu1 %v723_v20 }
  0x2d   : > { %381 = vmatpush1.bf16.msra.mxu0 %v724_v21  ;;  %678 = vmatprep.subr.bf16.mxu1 %v744_v3  ;;  %v492_v21 = vunpack.c.0.s8 %v491_v8 }
  0x2e   : > { %382 = vmatprep.subr.bf16.mxu0 %v725_v22 }
  0x2f   : > { %v495_v33 = vsub.s32 %v492_v21, %v873_v31 }
  0x30   : > { %679 = vmatpush3.bf16.msra.mxu1 %v727_v23 }
  0x31   : > { %383 = vmatpush1.bf16.msra.mxu0 %v728_v24  ;;  %680 = vmatprep.subr.bf16.mxu1 %v744_v3 }
  0x32   : > { %384 = vmatprep.subr.bf16.mxu0 %v729_v25 }
  0x34   : > { %681 = vmatpush3.bf16.msra.mxu1 %v731_v26 }
  0x35   : > { %385 = vmatpush1.bf16.msra.mxu0 %v732_v28 }
  0x37   : > { %683 = vmatmul.mubr.bf16.vlgmr.msra.gmra.mxu1 %v192_v29 }
  0x38   : > { %403 = vmatmul.mubr.bf16.vlgmr.msra.gmra.mxu0 %v192_v29 }
  0xf7   : > { %v445_v41 = vpop.f32.mrf.mxu1 }
  0xf8   : > { %v446_v43 = vadd.f32 %v445_v41, %v238_v37  ;;  %v404_v44 = vpop.f32.mrf.mxu0 }
  0xf9   : > { %v405_v46 = vadd.f32 %v404_v44, %v230_v39  ;;  %v684_v47 = vpop.f32.mrf.mxu1 }
  0xfa   : > { %v453_v48 = vmax.f32 %v446_v43, 0.0  ;;  %v406_v49 = vpop.f32.mrf.mxu0 }
  0xfb   : > { %v451_v50 = vmax.f32 %v405_v46, 0.0  ;;  %v407_v51 = vadd.f32 %v406_v49, %v234_v42  ;;  %v448_v52 = vpop.f32.mrf.mxu1 }
  0xfc   : > { %v466_v53 = vsel %vm883_vm2, %v453_v48, 0.0  ;;  %v408_v54 = vpop.f32.mrf.mxu0  ;;  %v467_v48 = vld [vmem:[#allocation2] sm:$0x7] }
  0xfd   : > { %v480_v55 = vrot.slane %v466_v53, 4  ;;  %v522_v56 = vmul.f32 %v466_v53, %v466_v53  ;;  %v464_v57 = vsel %vm883_vm2, %v451_v50, 0.0  ;;  %v452_v58 = vmax.f32 %v407_v51, 0.0  ;;  %v685_v59 = vpop.f32.mrf.mxu1  ;;  %v519_v51 = vld [vmem:[#allocation3] sm:$0x7] }
  0xfe   : > { %v468_v60 = vrot.slane %v464_v57, 4  ;;  %v520_v61 = vmul.f32 %v464_v57, %v464_v57  ;;  %v409_v62 = vpop.f32.mrf.mxu0 }
  0xff   : > { %v481_v63 = vadd.f32 %v480_v55, %v466_v53  ;;  %v535_v0 = vrot.slane %v522_v56, 4  ;;  %v465_v1 = vsel %vm883_vm2, %v452_v58, 0.0 }
 0x100   : > { %v469_v2 = vadd.f32 %v468_v60, %v464_v57  ;;  %v523_v3 = vrot.slane %v520_v61, 4  ;;  %v474_v4 = vrot.slane %v465_v1, 4  ;;  %v521_v5 = vmul.f32 %v465_v1, %v465_v1 }
 0x101   : > { %v482_v6 = vrot.slane %v481_v63, 2  ;;  %v536_v9 = vadd.f32 %v535_v0, %v522_v56 }
 0x102   : > { %v470_v10 = vrot.slane %v469_v2, 2  ;;  %v524_v11 = vadd.f32 %v523_v3, %v520_v61  ;;  %v475_v12 = vadd.f32 %v474_v4, %v465_v1  ;;  %v529_v13 = vrot.slane %v521_v5, 4 }
 0x103   : > { %v483_v14 = vadd.f32 %v482_v6, %v481_v63  ;;  %v537_v15 = vrot.slane %v536_v9, 2 }
 0x104   : > { %v471_v16 = vadd.f32 %v470_v10, %v469_v2  ;;  %v525_v17 = vrot.slane %v524_v11, 2  ;;  %v476_v18 = vrot.slane %v475_v12, 2  ;;  %v530_v19 = vadd.f32 %v529_v13, %v521_v5 }
 0x105   : > { %v484_v20 = vrot.slane %v483_v14, 1  ;;  %v538_v22 = vadd.f32 %v537_v15, %v536_v9 }
 0x106   : > { %v472_v23 = vrot.slane %v471_v16, 1  ;;  %v526_v24 = vadd.f32 %v525_v17, %v524_v11  ;;  %v477_v25 = vadd.f32 %v476_v18, %v475_v12  ;;  %v531_v26 = vrot.slane %v530_v19, 2 }
 0x107   : > { %v539_v27 = vrot.slane %v538_v22, 1  ;;  %v485_v34 = vadd.f32 %v484_v20, %v483_v14 }
 0x108   : > { %v527_v28 = vrot.slane %v526_v24, 1  ;;  %v478_v29 = vrot.slane %v477_v25, 1  ;;  %v532_v32 = vadd.f32 %v531_v26, %v530_v19  ;;  %v473_v35 = vadd.f32 %v472_v23, %v471_v16 }
 0x109   : > { %v540_v38 = vadd.f32 %v539_v27, %v538_v22  ;;  %v503_v42 = vrot.slane %v485_v34, %v495_v33 }
 0x10a   : > { %v479_v36 = vadd.f32 %v478_v29, %v477_v25  ;;  %v533_v37 = vrot.slane %v532_v32, 1  ;;  %v528_v39 = vadd.f32 %v527_v28, %v526_v24 }
 0x10b   : > { %v558_v45 = vrot.slane %v540_v38, %v495_v33 }
 0x10c   : > { %v489_v40 = vcombine.low %v473_v35, %v479_v36  ;;  %v534_v41 = vadd.f32 %v533_v37, %v532_v32 }
 0x10e   : > { %v496_v43 = vrot.slane %v489_v40, %v495_v33  ;;  %v544_v44 = vcombine.low %v528_v39, %v534_v41 }
 0x110   : > { %v504_v46 = vcombine.low %v496_v43, %v503_v42  ;;  %v551_v47 = vrot.slane %v544_v44, %v495_v33 }
 0x112   : > { %v511_v49 = vrot.slane %v504_v46, %v495_v33  ;;  %v559_v50 = vcombine.low %v551_v47, %v558_v45 }
 0x114   : > { %v513_v52 = vadd.f32 %v511_v49, %v467_v48  ;;  %v566_v53 = vrot.slane %v559_v50, %v495_v33  ;;  %573 = sbr.rel (%p654_p5) target bundleno = 356 (0x164), region = 40 }
 0x116   : > { %518 = vst.msk [vmem:[#allocation2] sm:$0x7] %vm895_vm3, %v513_v52  ;;  %v568_v54 = vadd.f32 %v566_v53, %v519_v51 }
 0x118   : > { %569 = vst.msk [vmem:[#allocation3] sm:$0x7] %vm895_vm3, %v568_v54 }
 0x119   : > { %v576_v55 = vstv %s575_s7 }
 0x11a   : > { %733 = vrcp.f32 %v576_v55 }
 0x11d   : > { %v579_v56 = vld [vmem:[#allocation2] sm:$0x7] }
 0x11f   : > { %v582_v58 = vld [vmem:[#allocation3] sm:$0x7] }
 0x127   : > { %v734_v30 = vpop.eup %733 }
 0x128   : > { %686 = vpush %v734_v30 }
 0x159   : > { %s687_s8 = spop %686 }
 0x15a   : > { %v580_v57 = vstv %s687_s8 }
 0x15b   : > { %v581_v59 = vmul.f32 %v580_v57, %v579_v56  ;;  %v583_v60 = vmul.f32 %v582_v58, %v580_v57 }
 0x15d   : > { %v584_v61 = vmul.f32 %v581_v59, %v581_v59  ;;  %587 = vst.msk [vmem:[%s921_s4] sm:$0x7] %vm895_vm3, %v581_v59 }
 0x15f   : > { %v585_v62 = vsub.f32 %v583_v60, %v584_v61 }
 0x161   : > { %v586_v63 = vmax.f32 %v585_v62, 0.0 }
 0x163   : > { %588 = vst.msk [vmem:[%s922_s5] sm:$0x7] %vm895_vm3, %v586_v63 }
 0x164 PF: > { %s17_s20 = sadd.s32 1, %s741_s20  }
 0x165   : > { %p14_p6 = scmp.ge.s32.totalorder %s17_s20, 5  }
 0x167   :  { %16 = sbr.rel (!%p14_p6) target bundleno = 2 (0x2), region = 74 }

// kernel: ann_forward.6
= control target key start
LH: loop header
LB: loop body
LE: loop exit
PB: predicated region body
PF: predicated region fallthrough
CT: control target
= control target key end

     0   :  { %s1320_s26 = smov 0   ;;  %s1595_s0 = inlined_call_operand.<no memory space> [shape: s32[1], index: 0, kind: input, shape index: {}]   ;;  %s1596_s1 = inlined_call_operand.vmem [shape: f32[24,128], index: 1, kind: input, shape index: {}]   ;;  %s1597_s2 = inlined_call_operand.vmem [shape: bf16[128,384], index: 2, kind: input, shape index: {}]   ;;  %s1598_s3 = inlined_call_operand.vmem [shape: f32[1,384], index: 3, kind: input, shape index: {}]   ;;  %s1599_s4 = inlined_call_operand.vmem [shape: bf16[384,256], index: 4, kind: input, shape index: {}]   ;;  %s1600_s5 = inlined_call_operand.vmem [shape: f32[1,256], index: 5, kind: input, shape index: {}]   ;;  %s1601_s6 = inlined_call_operand.vmem [shape: f32[1,256], index: 6, kind: output, shape index: {0}]   ;;  %s1602_s7 = inlined_call_operand.vmem [shape: f32[1,256], index: 7, kind: output, shape index: {1}]  }
   0x1   :  { %13 = sst [smem:[#allocation5]] %s1595_s0 }
   0x2 LB: > { %s1326_s27 = sadd.s32 4294967295, %s1270_s26   ;;  %p1035_p0 = scmp.ge.s32.totalorder %s1270_s26, 1  ;;  %s1270_s26 = sphi %s1320_s26, %s19_s26  }
   0x3   : > { %p206_p1 = scmp.lt.s32.totalorder %s1270_s26, 4 }
   0x5   : > { %p207_p2 = pnand %p1035_p0, %p206_p1 }
   0x6   : > { %p230_p3 = scmp.lt.s32.totalorder (!%p207_p2), %s1326_s27, 2  ;;  %p1037_p4 = scmp.ne.s32.totalorder (!%p207_p2), %s1326_s27, 0 }
   0x7   : > { %210 = sbr.rel (%p207_p2) target bundleno = 558 (0x22e), region = 40 }
   0xc   : > { %s231_s0 = scalar_select %p230_p3, %s1326_s27, 2 }
   0xd   : > { %238 = sbr.rel (%p1037_p4) target bundleno = 22 (0x16), region = 44 }
   0xe   : > { %s1036_s28 = sshll.u32 %s231_s0, 3 }
   0xf   : > { %s1335_s8 = scalar_lea.vmem %s1596_s1, %s1036_s28 }
  0x12   : > { %v239_v0 = vlaneseq  ;;  %v1272_v1 = vmov 0.0  }
  0x14   : > { %vm241_vm0 = vcmp.lt.s32.totalorder %v239_v0, 256 }
  0x15   : > { %243 = vst.msk [vmem:[#allocation2] sm:$0x3] %vm241_vm0, %v1272_v1  ;;  %244 = vst.msk [vmem:[#allocation3] sm:$0x3] %vm241_vm0, %v1272_v1 }
  0x16 PF: > { %v1158_v2 = vld [vmem:[%s1597_s2 + $0xac] ss:$12 sps:$4 sm:$0xff]   ;;  %v1273_v3 = vmov 0.0   ;;  %v1160_v4 = vld [vmem:[%s1597_s2 + $0xb0] ss:$12 sps:$4 sm:$0xff]   ;;  %vm1274_vm1 = vmmov 0  }
  0x17   : > { %1123 = vmatprep.subr.bf16.mxu1 %v1273_v3  ;;  %1139 = vmatprep.mubr.msk.bf16.mxu1 %vm1274_vm1, %v1273_v3  ;;  %v1161_v5 = vld [vmem:[%s1597_s2 + $0xa8] ss:$12 sps:$4 sm:$0xff]   ;;  %v1275_v7 = vmov 0   ;;  %v1164_v8 = vld [vmem:[%s1597_s2 + $0x98] ss:$12 sps:$4 sm:$0xff]   ;;  %s900_s24 = sld [smem:[#allocation5]] }
  0x18   : > { %424 = vmatprep.subr.bf16.mxu0 %v1158_v2  ;;  %1124 = vmatpush3.bf16.msra.mxu1 %v1160_v4  ;;  %v1162_v6 = vld [vmem:[%s1597_s2 + $0x94] ss:$12 sps:$4 sm:$0xff]   ;;  %v1165_v9 = vld [vmem:[%s1597_s2 + $0x90] ss:$12 sps:$4 sm:$0xff]   ;;  %v1169_v12 = vld [vmem:[%s1597_s2 + $0x78] ss:$12 sps:$4 sm:$0xff]  }
  0x19   : > { %456 = vmatprep.mubr.bf16.mxu0 %v1275_v7  ;;  %425 = vmatpush1.bf16.msra.mxu0 %v1161_v5  ;;  %v1166_v10 = vld [vmem:[%s1597_s2 + $0x7c] ss:$12 sps:$4 sm:$0xff]   ;;  %v1168_v11 = vld [vmem:[%s1597_s2 + $0x80] ss:$12 sps:$4 sm:$0xff]   ;;  %v1170_v13 = vld [vmem:[%s1597_s2 + $0x64] ss:$12 sps:$4 sm:$0xff]  }
  0x1a   : > { %1125 = vmatprep.subr.bf16.mxu1 %v1273_v3  ;;  %426 = vmatprep.subr.bf16.mxu0 %v1162_v6  ;;  %v1172_v14 = vld [vmem:[%s1597_s2 + $0x68] ss:$12 sps:$4 sm:$0xff]   ;;  %v1173_v15 = vld [vmem:[%s1597_s2 + $0x60] ss:$12 sps:$4 sm:$0xff]   ;;  %v1176_v17 = vld [vmem:[%s1597_s2 + $0x50] ss:$12 sps:$4 sm:$0xff]  }
  0x1b   : > { %v1174_v16 = vld [vmem:[%s1597_s2 + $0x4c] ss:$12 sps:$4 sm:$0xff]   ;;  %v1177_v18 = vld [vmem:[%s1597_s2 + $0x48] ss:$12 sps:$4 sm:$0xff]   ;;  %v1181_v21 = vld [vmem:[%s1597_s2 + $0x30] ss:$12 sps:$4 sm:$0xff]  }
  0x1c   : > { %1126 = vmatpush3.bf16.msra.mxu1 %v1164_v8  ;;  %v1178_v19 = vld [vmem:[%s1597_s2 + $0x34] ss:$12 sps:$4 sm:$0xff]   ;;  %v1180_v20 = vld [vmem:[%s1597_s2 + $0x38] ss:$12 sps:$4 sm:$0xff]   ;;  %v1182_v22 = vld [vmem:[%s1597_s2 + $0x1c] ss:$12 sps:$4 sm:$0xff]  }
  0x1d   : > { %427 = vmatpush1.bf16.msra.mxu0 %v1165_v9  ;;  %1127 = vmatprep.subr.bf16.mxu1 %v1273_v3  ;;  %v1184_v23 = vld [vmem:[%s1597_s2 + $0x20] ss:$12 sps:$4 sm:$0xff]   ;;  %v1185_v24 = vld [vmem:[%s1597_s2 + $0x18] ss:$12 sps:$4 sm:$0xff]   ;;  %v1188_v26 = vld [vmem:[%s1597_s2 + $0x8] ss:$12 sps:$4 sm:$0xff]  }
  0x1e   : > { %428 = vmatprep.subr.bf16.mxu0 %v1166_v10  ;;  %v1186_v25 = vld [vmem:[%s1597_s2 + $0x4] ss:$12 sps:$4 sm:$0xff]   ;;  %v1189_v28 = vld [vmem:[%s1597_s2] ss:$12 sps:$4 sm:$0xff]   ;;  %v1192_v29 = vld [vmem:[%s1599_s4 + $0x74] ss:$8 sps:$4 sm:$0xff]  }
  0x1f   : > { %v245_v27 = vld [vmem:[%s1335_s8] sm:$0xff]  ;;  %v1216_v31 = vld [vmem:[%s1599_s4 + $0x174] ss:$8 sps:$4 sm:$0xff]   ;;  %v1214_v32 = vld [vmem:[%s1599_s4 + $0x170] ss:$8 sps:$4 sm:$0xff]   ;;  %s1110_s28 = sshll.u32 %s1326_s27, 3 }
  0x20   : > { %1128 = vmatpush3.bf16.msra.mxu1 %v1168_v11  ;;  %v246_v30 = vpack.c.bf16 %v245_v27, %v245_v27  ;;  %v1190_v33 = vld [vmem:[%s1599_s4 + $0x70] ss:$8 sps:$4 sm:$0xff]   ;;  %v1195_v34 = vld [vmem:[%s1599_s4 + $0x64] ss:$8 sps:$4 sm:$0xff]   ;;  %v1193_v36 = vld [vmem:[%s1599_s4 + $0x60] ss:$8 sps:$4 sm:$0xff]  }
  0x21   : > { %429 = vmatpush1.bf16.msra.mxu0 %v1169_v12  ;;  %1129 = vmatprep.subr.bf16.mxu1 %v1273_v3  ;;  %v1222_v35 = vld [vmem:[%s1599_s4 + $0x164] ss:$8 sps:$4 sm:$0xff]   ;;  %v1220_v37 = vld [vmem:[%s1599_s4 + $0x160] ss:$8 sps:$4 sm:$0xff]   ;;  %v1228_v38 = vld [vmem:[%s1599_s4 + $0x154] ss:$8 sps:$4 sm:$0xff]  }
  0x22   : > { %430 = vmatprep.subr.bf16.mxu0 %v1170_v13  ;;  %v1198_v39 = vld [vmem:[%s1599_s4 + $0x54] ss:$8 sps:$4 sm:$0xff]   ;;  %v1196_v40 = vld [vmem:[%s1599_s4 + $0x50] ss:$8 sps:$4 sm:$0xff]   ;;  %v1234_v42 = vld [vmem:[%s1599_s4 + $0x144] ss:$8 sps:$4 sm:$0xff]  }
  0x23   : > { %v1226_v41 = vld [vmem:[%s1599_s4 + $0x150] ss:$8 sps:$4 sm:$0xff]   ;;  %v1201_v43 = vld [vmem:[%s1599_s4 + $0x44] ss:$8 sps:$4 sm:$0xff]   ;;  %v1199_v44 = vld [vmem:[%s1599_s4 + $0x40] ss:$8 sps:$4 sm:$0xff]  }
  0x24   : > { %1130 = vmatpush3.bf16.msra.mxu1 %v1172_v14  ;;  %v1232_v45 = vld [vmem:[%s1599_s4 + $0x140] ss:$8 sps:$4 sm:$0xff]   ;;  %v1240_v46 = vld [vmem:[%s1599_s4 + $0x134] ss:$8 sps:$4 sm:$0xff]   ;;  %v1202_v48 = vld [vmem:[%s1599_s4 + $0x30] ss:$8 sps:$4 sm:$0xff]   ;;  %v281_v14 = vlaneseq }
  0x25   : > { %431 = vmatpush1.bf16.msra.mxu0 %v1173_v15  ;;  %1131 = vmatprep.subr.bf16.mxu1 %v1273_v3  ;;  %v1204_v47 = vld [vmem:[%s1599_s4 + $0x34] ss:$8 sps:$4 sm:$0xff]   ;;  %v1238_v49 = vld [vmem:[%s1599_s4 + $0x130] ss:$8 sps:$4 sm:$0xff]   ;;  %v1246_v50 = vld [vmem:[%s1599_s4 + $0x124] ss:$8 sps:$4 sm:$0xff]  }
  0x26   : > { %432 = vmatprep.subr.bf16.mxu0 %v1174_v16  ;;  %v1207_v51 = vld [vmem:[%s1599_s4 + $0x24] ss:$8 sps:$4 sm:$0xff]   ;;  %v1244_v52 = vld [vmem:[%s1599_s4 + $0x120] ss:$8 sps:$4 sm:$0xff]   ;;  %v1252_v54 = vld [vmem:[%s1599_s4 + $0x114] ss:$8 sps:$4 sm:$0xff]  }
  0x27   : > { %v1205_v53 = vld [vmem:[%s1599_s4 + $0x20] ss:$8 sps:$4 sm:$0xff]   ;;  %v1210_v55 = vld [vmem:[%s1599_s4 + $0x14] ss:$8 sps:$4 sm:$0xff]   ;;  %v1250_v56 = vld [vmem:[%s1599_s4 + $0x110] ss:$8 sps:$4 sm:$0xff]  }
  0x28   : > { %1132 = vmatpush3.bf16.msra.mxu1 %v1176_v17  ;;  %v1208_v57 = vld [vmem:[%s1599_s4 + $0x10] ss:$8 sps:$4 sm:$0xff]   ;;  %v1213_v58 = vld [vmem:[%s1599_s4 + $0x4] ss:$8 sps:$4 sm:$0xff]   ;;  %v1211_v59 = vld [vmem:[%s1599_s4] ss:$8 sps:$4 sm:$0xff]  }
  0x29   : > { %433 = vmatpush1.bf16.msra.mxu0 %v1177_v18  ;;  %1133 = vmatprep.subr.bf16.mxu1 %v1273_v3  ;;  %v1219_v60 = vld [vmem:[%s1599_s4 + $0xf4] ss:$8 sps:$4 sm:$0xff]   ;;  %v1217_v61 = vld [vmem:[%s1599_s4 + $0xf0] ss:$8 sps:$4 sm:$0xff]   ;;  %v1225_v62 = vld [vmem:[%s1599_s4 + $0xe4] ss:$8 sps:$4 sm:$0xff]  }
  0x2a   : > { %434 = vmatprep.subr.bf16.mxu0 %v1178_v19  ;;  %v1223_v63 = vld [vmem:[%s1599_s4 + $0xe0] ss:$8 sps:$4 sm:$0xff]   ;;  %v1231_v0 = vld [vmem:[%s1599_s4 + $0xd4] ss:$8 sps:$4 sm:$0xff]   ;;  %v1229_v1 = vld [vmem:[%s1599_s4 + $0xd0] ss:$8 sps:$4 sm:$0xff]  }
  0x2b   : > { %v1237_v2 = vld [vmem:[%s1599_s4 + $0xc4] ss:$8 sps:$4 sm:$0xff]   ;;  %v1243_v4 = vld [vmem:[%s1599_s4 + $0xb4] ss:$8 sps:$4 sm:$0xff]   ;;  %v1241_v5 = vld [vmem:[%s1599_s4 + $0xb0] ss:$8 sps:$4 sm:$0xff]  }
  0x2c   : > { %1134 = vmatpush3.bf16.msra.mxu1 %v1180_v20  ;;  %v1249_v6 = vld [vmem:[%s1599_s4 + $0xa4] ss:$8 sps:$4 sm:$0xff]   ;;  %v1255_v8 = vld [vmem:[%s1599_s4 + $0x94] ss:$8 sps:$4 sm:$0xff]   ;;  %v1253_v10 = vld [vmem:[%s1599_s4 + $0x90] ss:$8 sps:$4 sm:$0xff]  }
  0x2d   : > { %435 = vmatpush1.bf16.msra.mxu0 %v1181_v21  ;;  %1135 = vmatprep.subr.bf16.mxu1 %v1273_v3  ;;  %v1258_v9 = vld [vmem:[%s1599_s4 + $0x104] ss:$8 sps:$4 sm:$0xff]   ;;  %v1256_v11 = vld [vmem:[%s1599_s4 + $0x100] ss:$8 sps:$4 sm:$0xff]   ;;  %v1558_v15 = vshrl.u32 %v281_v14, 7  ;;  %vm1573_vm3 = vcmp.lt.s32.totalorder %v281_v14, 256 }
  0x2e   : > { %436 = vmatprep.subr.bf16.mxu0 %v1182_v22  ;;  %v1261_v12 = vld [vmem:[%s1599_s4 + $0x84] ss:$8 sps:$4 sm:$0xff]   ;;  %v1259_v13 = vld [vmem:[%s1599_s4 + $0x80] ss:$8 sps:$4 sm:$0xff]   ;;  %p1111_p5 = scmp.ne.s32.totalorder %s1326_s27, 2 }
  0x2f   : > { %v291_v16 = vsub.s32 2, %v1558_v15  ;;  %v279_v17 = vld [vmem:[%s1598_s3] sm:$0x7]  ;;  %v283_v18 = vsub.s32 0, %v1558_v15  ;;  %v287_v19 = vsub.s32 1, %v1558_v15  ;;  %s983_s29 = sld [smem:[#allocation5]] (!%p1111_p5) }
  0x30   : > { %1136 = vmatpush3.bf16.msra.mxu1 %v1184_v23 }
  0x31   : > { %437 = vmatpush1.bf16.msra.mxu0 %v1185_v24  ;;  %1137 = vmatprep.subr.bf16.mxu1 %v1273_v3  ;;  %v1235_v3 = vld [vmem:[%s1599_s4 + $0xc0] ss:$8 sps:$4 sm:$0xff]   ;;  %v292_v20 = vrot.slane %v279_v17, %v291_v16  ;;  %v284_v21 = vrot.slane %v279_v17, %v283_v18  ;;  %v288_v23 = vrot.slane %v279_v17, %v287_v19 }
  0x32   : > { %438 = vmatprep.subr.bf16.mxu0 %v1186_v25 }
  0x34   : > { %1138 = vmatpush3.bf16.msra.mxu1 %v1188_v26 }
  0x35   : > { %439 = vmatpush1.bf16.msra.mxu0 %v1189_v28  ;;  %852 = vmatprep.subr.bf16.mxu1 %v1216_v31  ;;  %s984_s30 = scvt.s32.f32 (!%p1111_p5), %s983_s29 }
  0x36   : > { %811 = vmatprep.subr.bf16.mxu0 %v1192_v29 }
  0x37   : > { %1140 = vmatmul.mubr.bf16.vlgmr.msra.gmra.mxu1 %v246_v30 }
  0x38   : > { %457 = vmatmul.mubr.bf16.vlgmr.msra.gmra.mxu0 %v246_v30  ;;  %853 = vmatpush1.bf16.msra.mxu1 %v1214_v32 }
  0x39   : > { %812 = vmatpush1.bf16.msra.mxu0 %v1190_v33  ;;  %854 = vmatprep.subr.bf16.mxu1 %v1222_v35 }
  0x3a   : > { %813 = vmatprep.subr.bf16.mxu0 %v1195_v34  ;;  %884 = vmatprep.mubr.bf16.mxu1 %v1275_v7  ;;  %v1247_v7 = vld [vmem:[%s1599_s4 + $0xa0] ss:$8 sps:$4 sm:$0xff]  }
  0x3c   : > { %855 = vmatpush1.bf16.msra.mxu1 %v1220_v37 }
  0x3d   : > { %814 = vmatpush1.bf16.msra.mxu0 %v1193_v36  ;;  %856 = vmatprep.subr.bf16.mxu1 %v1228_v38 }
  0x3e   : > { %815 = vmatprep.subr.bf16.mxu0 %v1198_v39 }
  0x40   : > { %857 = vmatpush1.bf16.msra.mxu1 %v1226_v41 }
  0x41   : > { %816 = vmatpush1.bf16.msra.mxu0 %v1196_v40  ;;  %858 = vmatprep.subr.bf16.mxu1 %v1234_v42  ;;  %v559_v40 = vld [vmem:[%s1600_s5] sm:$0x3] }
  0x42   : > { %817 = vmatprep.subr.bf16.mxu0 %v1201_v43  ;;  %v564_v42 = vrot.slane %v559_v40, %v283_v18  ;;  %v898_v43 = vstv %s1110_s28 }
  0x44   : > { %859 = vmatpush1.bf16.msra.mxu1 %v1232_v45  ;;  %v568_v45 = vrot.slane %v559_v40, %v287_v19 }
  0x45   : > { %818 = vmatpush1.bf16.msra.mxu0 %v1199_v44  ;;  %860 = vmatprep.subr.bf16.mxu1 %v1240_v46 }
  0x46   : > { %819 = vmatprep.subr.bf16.mxu0 %v1204_v47  ;;  %v899_v47 = vadd.s32 %v898_v43, %v1558_v15 }
  0x48   : > { %861 = vmatpush1.bf16.msra.mxu1 %v1238_v49 }
  0x49   : > { %820 = vmatpush1.bf16.msra.mxu0 %v1202_v48  ;;  %862 = vmatprep.subr.bf16.mxu1 %v1246_v50  ;;  %v901_v50 = vstv %s900_s24 }
  0x4a   : > { %821 = vmatprep.subr.bf16.mxu0 %v1207_v51  ;;  %vm902_vm2 = vcmp.lt.s32.totalorder %v899_v47, %v901_v50 }
  0x4c   : > { %863 = vmatpush1.bf16.msra.mxu1 %v1244_v52 }
  0x4d   : > { %822 = vmatpush1.bf16.msra.mxu0 %v1205_v53  ;;  %864 = vmatprep.subr.bf16.mxu1 %v1252_v54 }
  0x4e   : > { %823 = vmatprep.subr.bf16.mxu0 %v1210_v55 }
  0x50   : > { %865 = vmatpush1.bf16.msra.mxu1 %v1250_v56 }
  0x51   : > { %824 = vmatpush1.bf16.msra.mxu0 %v1208_v57  ;;  %866 = vmatprep.subr.bf16.mxu1 %v1258_v9 }
  0x52   : > { %825 = vmatprep.subr.bf16.mxu0 %v1213_v58 }
  0x54   : > { %867 = vmatpush1.bf16.msra.mxu1 %v1256_v11 }
  0x55   : > { %826 = vmatpush1.bf16.msra.mxu0 %v1211_v59 }
  0x56   : > { %827 = vmatprep.subr.bf16.mxu0 %v1219_v60 }
  0x59   : > { %828 = vmatpush2.bf16.msra.mxu0 %v1217_v61 }
  0x5a   : > { %829 = vmatprep.subr.bf16.mxu0 %v1225_v62 }
  0x5d   : > { %830 = vmatpush2.bf16.msra.mxu0 %v1223_v63 }
  0x5e   : > { %831 = vmatprep.subr.bf16.mxu0 %v1231_v0 }
  0x61   : > { %832 = vmatpush2.bf16.msra.mxu0 %v1229_v1 }
  0x62   : > { %833 = vmatprep.subr.bf16.mxu0 %v1237_v2 }
  0x65   : > { %834 = vmatpush2.bf16.msra.mxu0 %v1235_v3 }
  0x66   : > { %835 = vmatprep.subr.bf16.mxu0 %v1243_v4  ;;  %v1276_v4 = vmov 1966171168  }
  0x69   : > { %836 = vmatpush2.bf16.msra.mxu0 %v1241_v5  ;;  %v924_v5 = vunpack.c.l.s4 %v1276_v4 }
  0x6a   : > { %837 = vmatprep.subr.bf16.mxu0 %v1249_v6 }
  0x6b   : > { %v925_v16 = vunpack.c.0.s8 %v924_v5 }
  0x6d   : > { %838 = vmatpush2.bf16.msra.mxu0 %v1247_v7 }
  0x6e   : > { %839 = vmatprep.subr.bf16.mxu0 %v1255_v8 }
  0x71   : > { %840 = vmatpush2.bf16.msra.mxu0 %v1253_v10 }
  0x72   : > { %841 = vmatprep.subr.bf16.mxu0 %v1261_v12 }
  0x75   : > { %842 = vmatpush2.bf16.msra.mxu0 %v1259_v13 }
  0xf7   : > { %v499_v22 = vpop.f32.mrf.mxu1 }
  0xf8   : > { %v500_v24 = vadd.f32 %v499_v22, %v292_v20  ;;  %v458_v25 = vpop.f32.mrf.mxu0 }
  0xf9   : > { %v459_v26 = vadd.f32 %v458_v25, %v284_v21  ;;  %v1141_v27 = vpop.f32.mrf.mxu1 }
  0xfa   : > { %v507_v28 = vmax.f32 %v500_v24, 0.0  ;;  %v460_v29 = vpop.f32.mrf.mxu0 }
  0xfb   : > { %v461_v30 = vadd.f32 %v460_v29, %v288_v23  ;;  %v502_v31 = vpop.f32.mrf.mxu1  ;;  %v505_v33 = vmax.f32 %v459_v26, 0.0  ;;  %v928_v26 = vsub.s32 %v925_v16, %v1558_v15 }
  0xfc   : > { %v510_v32 = vpack.c.bf16 %v507_v28, %v507_v28  ;;  %v462_v34 = vpop.f32.mrf.mxu0 }
  0xfd   : > { %v506_v35 = vmax.f32 %v461_v30, 0.0  ;;  %v1142_v36 = vpop.f32.mrf.mxu1  ;;  %v508_v39 = vpack.c.bf16 %v505_v33, %v505_v33  ;;  %v907_v33 = vld [vmem:[#allocation2] sm:$0x3] }
  0xfe   : > { %v463_v37 = vpop.f32.mrf.mxu0  ;;  %885 = vmatmul.mubr.bf16.vlgmr.msra.gmra.mxu1 %v510_v32 }
  0xff   : > { %v509_v38 = vpack.c.bf16 %v506_v35, %v506_v35  ;;  %v944_v37 = vld [vmem:[#allocation3] sm:$0x3] }
 0x101   : > { %843 = vmatprep.mubr.bf16.mxu0 %v509_v38 }
 0x102   : > { %844 = vmatmul.mubr.bf16.vlgmr.msra.gmra.mxu0 %v508_v39 }
 0x1be   : > { %v886_v41 = vpop.f32.mrf.mxu1 }
 0x1c0   : > { %v888_v44 = vpop.f32.mrf.mxu1 }
 0x1c2   : > { %v845_v46 = vpop.f32.mrf.mxu0  ;;  %v890_v48 = vpop.f32.mrf.mxu1 }
 0x1c3   : > { %v846_v49 = vadd.f32 %v845_v46, %v564_v42 }
 0x1c4   : > { %v847_v51 = vpop.f32.mrf.mxu0  ;;  %v891_v52 = vpop.f32.mrf.mxu1 }
 0x1c5   : > { %v887_v53 = vadd.f32 %v886_v41, %v846_v49  ;;  %v848_v54 = vadd.f32 %v847_v51, %v568_v45 }
 0x1c6   : > { %v849_v55 = vpop.f32.mrf.mxu0 }
 0x1c7   : > { %v893_v56 = vmax.f32 %v887_v53, 0.0  ;;  %v889_v57 = vadd.f32 %v888_v44, %v848_v54 }
 0x1c8   : > { %v850_v58 = vpop.f32.mrf.mxu0 }
 0x1c9   : > { %v905_v59 = vsel %vm902_vm2, %v893_v56, 0.0  ;;  %v894_v60 = vmax.f32 %v889_v57, 0.0 }
 0x1ca   : > { %v908_v61 = vrot.slane %v905_v59, 4  ;;  %v945_v62 = vmul.f32 %v905_v59, %v905_v59 }
 0x1cb   : > { %v906_v63 = vsel %vm902_vm2, %v894_v60, 0.0 }
 0x1cc   : > { %v909_v0 = vadd.f32 %v908_v61, %v905_v59  ;;  %v947_v1 = vrot.slane %v945_v62, 4  ;;  %v914_v2 = vrot.slane %v906_v63, 4  ;;  %v946_v3 = vmul.f32 %v906_v63, %v906_v63 }
 0x1ce   : > { %v910_v6 = vrot.slane %v909_v0, 2  ;;  %v948_v7 = vadd.f32 %v947_v1, %v945_v62  ;;  %v915_v8 = vadd.f32 %v914_v2, %v906_v63  ;;  %v953_v9 = vrot.slane %v946_v3, 4 }
 0x1d0   : > { %v911_v10 = vadd.f32 %v910_v6, %v909_v0  ;;  %v949_v11 = vrot.slane %v948_v7, 2  ;;  %v916_v12 = vrot.slane %v915_v8, 2  ;;  %v954_v13 = vadd.f32 %v953_v9, %v946_v3 }
 0x1d2   : > { %v912_v17 = vrot.slane %v911_v10, 1  ;;  %v950_v18 = vadd.f32 %v949_v11, %v948_v7  ;;  %v917_v19 = vadd.f32 %v916_v12, %v915_v8  ;;  %v955_v20 = vrot.slane %v954_v13, 2 }
 0x1d4   : > { %v951_v21 = vrot.slane %v950_v18, 1  ;;  %v918_v22 = vrot.slane %v917_v19, 1  ;;  %v956_v23 = vadd.f32 %v955_v20, %v954_v13  ;;  %v913_v24 = vadd.f32 %v912_v17, %v911_v10 }
 0x1d6   : > { %v919_v25 = vadd.f32 %v918_v22, %v917_v19  ;;  %v957_v27 = vrot.slane %v956_v23, 1  ;;  %v952_v28 = vadd.f32 %v951_v21, %v950_v18 }
 0x1d8   : > { %v922_v29 = vcombine.low %v913_v24, %v919_v25  ;;  %v958_v30 = vadd.f32 %v957_v27, %v956_v23 }
 0x1da   : > { %v929_v31 = vrot.slane %v922_v29, %v928_v26  ;;  %v961_v32 = vcombine.low %v952_v28, %v958_v30 }
 0x1dc   : > { %v936_v34 = vrot.slane %v929_v31, %v928_v26  ;;  %v968_v35 = vrot.slane %v961_v32, %v928_v26 }
 0x1de   : > { %v938_v38 = vadd.f32 %v936_v34, %v907_v33  ;;  %v975_v39 = vrot.slane %v968_v35, %v928_v26  ;;  %982 = sbr.rel (%p1111_p5) target bundleno = 558 (0x22e), region = 48 }
 0x1e0   : > { %943 = vst.msk [vmem:[#allocation2] sm:$0x3] %vm1573_vm3, %v938_v38  ;;  %v977_v15 = vadd.f32 %v975_v39, %v944_v37 }
 0x1e2   : > { %978 = vst.msk [vmem:[#allocation3] sm:$0x3] %vm1573_vm3, %v977_v15 }
 0x1e3   : > { %v985_v40 = vstv %s984_s30 }
 0x1e4   : > { %1262 = vrcp.f32 %v985_v40 }
 0x1e7   : > { %v988_v41 = vld [vmem:[#allocation2] sm:$0x3] }
 0x1e9   : > { %v991_v43 = vld [vmem:[#allocation3] sm:$0x3] }
 0x1f1   : > { %v1263_v14 = vpop.eup %1262 }
 0x1f2   : > { %1143 = vpush %v1263_v14 }
 0x223   : > { %s1144_s9 = spop %1143 }
 0x224   : > { %v989_v42 = vstv %s1144_s9 }
 0x225   : > { %v990_v44 = vmul.f32 %v989_v42, %v988_v41  ;;  %v992_v45 = vmul.f32 %v991_v43, %v989_v42 }
 0x227   : > { %v993_v46 = vmul.f32 %v990_v44, %v990_v44  ;;  %996 = vst.msk [vmem:[%s1601_s6] sm:$0x3] %vm1573_vm3, %v990_v44 }
 0x229   : > { %v994_v47 = vsub.f32 %v992_v45, %v993_v46 }
 0x22b   : > { %v995_v48 = vmax.f32 %v994_v47, 0.0 }
 0x22d   : > { %997 = vst.msk [vmem:[%s1602_s7] sm:$0x3] %vm1573_vm3, %v995_v48 }
 0x22e PF: > { %s19_s26 = sadd.s32 1, %s1270_s26  }
 0x22f   : > { %p16_p6 = scmp.ge.s32.totalorder %s19_s26, 5  }
 0x231   :  { %18 = sbr.rel (!%p16_p6) target bundleno = 2 (0x2), region = 82 }

// kernel: ann_forward.7
= control target key start
LH: loop header
LB: loop body
LE: loop exit
PB: predicated region body
PF: predicated region fallthrough
CT: control target
= control target key end

     0   :  { %s1487_s24 = smov 0   ;;  %s1795_s0 = inlined_call_operand.vmem [shape: f32[24,128], index: 0, kind: input, shape index: {}]   ;;  %s1796_s1 = inlined_call_operand.vmem [shape: bf16[128,384], index: 1, kind: input, shape index: {}]   ;;  %s1797_s2 = inlined_call_operand.vmem [shape: f32[1,384], index: 2, kind: input, shape index: {}]   ;;  %s1798_s3 = inlined_call_operand.vmem [shape: bf16[384,256], index: 3, kind: input, shape index: {}]   ;;  %s1799_s4 = inlined_call_operand.vmem [shape: f32[1,256], index: 4, kind: input, shape index: {}]   ;;  %s1800_s5 = inlined_call_operand.vmem [shape: bf16[256,128], index: 5, kind: input, shape index: {}]   ;;  %s1801_s6 = inlined_call_operand.vmem [shape: f32[1,128], index: 6, kind: input, shape index: {}]   ;;  %s1802_s7 = inlined_call_operand.vmem [shape: f32[24,128], index: 7, kind: output, shape index: {}]  }
   0x1 LB: > { %s1156_s25 = sadd.s32 4294967295, %s1442_s24   ;;  %p1160_p0 = scmp.ge.s32.totalorder %s1442_s24, 1  ;;  %s1442_s24 = sphi %s1487_s24, %s17_s24  }
   0x2   : > { %p236_p1 = scmp.lt.s32.totalorder %s1442_s24, 4 }
   0x4   : > { %p237_p2 = pnand %p1160_p0, %p236_p1 }
   0x5   : > { %p266_p3 = scmp.lt.s32.totalorder (!%p237_p2), %s1156_s25, 2 }
   0x6   : > { %240 = sbr.rel (%p237_p2) target bundleno = 651 (0x28b), region = 48 }
   0xb   : > { %v1316_v0 = vld [vmem:[%s1796_s1 + $0xac] ss:$12 sps:$4 sm:$0xff]   ;;  %v1444_v1 = vmov 0.0   ;;  %v1318_v2 = vld [vmem:[%s1796_s1 + $0xb0] ss:$12 sps:$4 sm:$0xff]   ;;  %vm1445_vm0 = vmmov 0  }
   0xc   : > { %1285 = vmatprep.subr.bf16.mxu1 %v1444_v1  ;;  %1301 = vmatprep.mubr.msk.bf16.mxu1 %vm1445_vm0, %v1444_v1  ;;  %v1319_v3 = vld [vmem:[%s1796_s1 + $0xa8] ss:$12 sps:$4 sm:$0xff]   ;;  %v1446_v5 = vmov 0   ;;  %v1322_v6 = vld [vmem:[%s1796_s1 + $0x98] ss:$12 sps:$4 sm:$0xff]   ;;  %s1804_s25 = smov (!%p266_p3, %s1156_s25), 2 }
   0xd   : > { %454 = vmatprep.subr.bf16.mxu0 %v1316_v0  ;;  %1286 = vmatpush3.bf16.msra.mxu1 %v1318_v2  ;;  %v1320_v4 = vld [vmem:[%s1796_s1 + $0x94] ss:$12 sps:$4 sm:$0xff]   ;;  %v1323_v7 = vld [vmem:[%s1796_s1 + $0x90] ss:$12 sps:$4 sm:$0xff]   ;;  %v1327_v10 = vld [vmem:[%s1796_s1 + $0x78] ss:$12 sps:$4 sm:$0xff]  }
   0xe   : > { %486 = vmatprep.mubr.bf16.mxu0 %v1446_v5  ;;  %455 = vmatpush1.bf16.msra.mxu0 %v1319_v3  ;;  %v1324_v8 = vld [vmem:[%s1796_s1 + $0x7c] ss:$12 sps:$4 sm:$0xff]   ;;  %v1326_v9 = vld [vmem:[%s1796_s1 + $0x80] ss:$12 sps:$4 sm:$0xff]   ;;  %v1328_v11 = vld [vmem:[%s1796_s1 + $0x64] ss:$12 sps:$4 sm:$0xff]  }
   0xf   : > { %1287 = vmatprep.subr.bf16.mxu1 %v1444_v1  ;;  %456 = vmatprep.subr.bf16.mxu0 %v1320_v4  ;;  %v1330_v12 = vld [vmem:[%s1796_s1 + $0x68] ss:$12 sps:$4 sm:$0xff]   ;;  %v1331_v13 = vld [vmem:[%s1796_s1 + $0x60] ss:$12 sps:$4 sm:$0xff]   ;;  %v1334_v15 = vld [vmem:[%s1796_s1 + $0x50] ss:$12 sps:$4 sm:$0xff]  }
  0x10   : > { %v1332_v14 = vld [vmem:[%s1796_s1 + $0x4c] ss:$12 sps:$4 sm:$0xff]   ;;  %v1335_v16 = vld [vmem:[%s1796_s1 + $0x48] ss:$12 sps:$4 sm:$0xff]   ;;  %v1339_v19 = vld [vmem:[%s1796_s1 + $0x30] ss:$12 sps:$4 sm:$0xff]  }
  0x11   : > { %1288 = vmatpush3.bf16.msra.mxu1 %v1322_v6  ;;  %v1336_v17 = vld [vmem:[%s1796_s1 + $0x34] ss:$12 sps:$4 sm:$0xff]   ;;  %v1338_v18 = vld [vmem:[%s1796_s1 + $0x38] ss:$12 sps:$4 sm:$0xff]   ;;  %v1340_v20 = vld [vmem:[%s1796_s1 + $0x1c] ss:$12 sps:$4 sm:$0xff]  }
  0x12   : > { %457 = vmatpush1.bf16.msra.mxu0 %v1323_v7  ;;  %1289 = vmatprep.subr.bf16.mxu1 %v1444_v1  ;;  %s1161_s20 = sshll.u32 %s1804_s25, 3  ;;  %v1342_v21 = vld [vmem:[%s1796_s1 + $0x20] ss:$12 sps:$4 sm:$0xff]   ;;  %v1343_v22 = vld [vmem:[%s1796_s1 + $0x18] ss:$12 sps:$4 sm:$0xff]  }
  0x13   : > { %458 = vmatprep.subr.bf16.mxu0 %v1324_v8  ;;  %s269_s29 = scalar_lea.vmem %s1795_s0, %s1161_s20  ;;  %v1344_v23 = vld [vmem:[%s1796_s1 + $0x4] ss:$12 sps:$4 sm:$0xff]   ;;  %v1346_v24 = vld [vmem:[%s1796_s1 + $0x8] ss:$12 sps:$4 sm:$0xff]   ;;  %v1347_v26 = vld [vmem:[%s1796_s1] ss:$12 sps:$4 sm:$0xff]   ;;  %s273_s9 = scalar_lea.vmem %s1802_s7, %s1161_s20 }
  0x14   : > { %v275_v25 = vld [vmem:[%s269_s29] sm:$0xff]  ;;  %v1350_v27 = vld [vmem:[%s1798_s3 + $0x74] ss:$8 sps:$4 sm:$0xff]   ;;  %v1372_v30 = vld [vmem:[%s1798_s3 + $0x170] ss:$8 sps:$4 sm:$0xff]  }
  0x15   : > { %1290 = vmatpush3.bf16.msra.mxu1 %v1326_v9  ;;  %v276_v28 = vpack.c.bf16 %v275_v25, %v275_v25  ;;  %v1374_v29 = vld [vmem:[%s1798_s3 + $0x174] ss:$8 sps:$4 sm:$0xff]   ;;  %v1348_v31 = vld [vmem:[%s1798_s3 + $0x70] ss:$8 sps:$4 sm:$0xff]   ;;  %v1353_v32 = vld [vmem:[%s1798_s3 + $0x64] ss:$8 sps:$4 sm:$0xff]  }
  0x16   : > { %459 = vmatpush1.bf16.msra.mxu0 %v1327_v10  ;;  %1291 = vmatprep.subr.bf16.mxu1 %v1444_v1  ;;  %v1380_v33 = vld [vmem:[%s1798_s3 + $0x164] ss:$8 sps:$4 sm:$0xff]   ;;  %v1351_v34 = vld [vmem:[%s1798_s3 + $0x60] ss:$8 sps:$4 sm:$0xff]   ;;  %v1386_v36 = vld [vmem:[%s1798_s3 + $0x154] ss:$8 sps:$4 sm:$0xff]  }
  0x17   : > { %460 = vmatprep.subr.bf16.mxu0 %v1328_v11  ;;  %v1378_v35 = vld [vmem:[%s1798_s3 + $0x160] ss:$8 sps:$4 sm:$0xff]   ;;  %v1356_v37 = vld [vmem:[%s1798_s3 + $0x54] ss:$8 sps:$4 sm:$0xff]   ;;  %v1354_v38 = vld [vmem:[%s1798_s3 + $0x50] ss:$8 sps:$4 sm:$0xff]  }
  0x18   : > { %v1384_v39 = vld [vmem:[%s1798_s3 + $0x150] ss:$8 sps:$4 sm:$0xff]   ;;  %v1392_v40 = vld [vmem:[%s1798_s3 + $0x144] ss:$8 sps:$4 sm:$0xff]   ;;  %v1357_v42 = vld [vmem:[%s1798_s3 + $0x40] ss:$8 sps:$4 sm:$0xff]  }
  0x19   : > { %1292 = vmatpush3.bf16.msra.mxu1 %v1330_v12  ;;  %v1359_v41 = vld [vmem:[%s1798_s3 + $0x44] ss:$8 sps:$4 sm:$0xff]   ;;  %v1390_v43 = vld [vmem:[%s1798_s3 + $0x140] ss:$8 sps:$4 sm:$0xff]   ;;  %v1398_v44 = vld [vmem:[%s1798_s3 + $0x134] ss:$8 sps:$4 sm:$0xff]  }
  0x1a   : > { %461 = vmatpush1.bf16.msra.mxu0 %v1331_v13  ;;  %1293 = vmatprep.subr.bf16.mxu1 %v1444_v1  ;;  %v1362_v45 = vld [vmem:[%s1798_s3 + $0x34] ss:$8 sps:$4 sm:$0xff]   ;;  %v1360_v46 = vld [vmem:[%s1798_s3 + $0x30] ss:$8 sps:$4 sm:$0xff]   ;;  %v1365_v48 = vld [vmem:[%s1798_s3 + $0x24] ss:$8 sps:$4 sm:$0xff]   ;;  %v311_v13 = vlaneseq }
  0x1b   : > { %462 = vmatprep.subr.bf16.mxu0 %v1332_v14  ;;  %v1396_v47 = vld [vmem:[%s1798_s3 + $0x130] ss:$8 sps:$4 sm:$0xff]   ;;  %v1404_v49 = vld [vmem:[%s1798_s3 + $0x124] ss:$8 sps:$4 sm:$0xff]   ;;  %v1402_v50 = vld [vmem:[%s1798_s3 + $0x120] ss:$8 sps:$4 sm:$0xff]  }
  0x1c   : > { %v1363_v51 = vld [vmem:[%s1798_s3 + $0x20] ss:$8 sps:$4 sm:$0xff]   ;;  %v1410_v52 = vld [vmem:[%s1798_s3 + $0x114] ss:$8 sps:$4 sm:$0xff]   ;;  %v1408_v54 = vld [vmem:[%s1798_s3 + $0x110] ss:$8 sps:$4 sm:$0xff]  }
  0x1d   : > { %1294 = vmatpush3.bf16.msra.mxu1 %v1334_v15  ;;  %v1368_v53 = vld [vmem:[%s1798_s3 + $0x14] ss:$8 sps:$4 sm:$0xff]   ;;  %v1366_v55 = vld [vmem:[%s1798_s3 + $0x10] ss:$8 sps:$4 sm:$0xff]   ;;  %v1371_v56 = vld [vmem:[%s1798_s3 + $0x4] ss:$8 sps:$4 sm:$0xff]  }
  0x1e   : > { %463 = vmatpush1.bf16.msra.mxu0 %v1335_v16  ;;  %1295 = vmatprep.subr.bf16.mxu1 %v1444_v1  ;;  %v1369_v57 = vld [vmem:[%s1798_s3] ss:$8 sps:$4 sm:$0xff]   ;;  %v1377_v58 = vld [vmem:[%s1798_s3 + $0xf4] ss:$8 sps:$4 sm:$0xff]   ;;  %v1375_v59 = vld [vmem:[%s1798_s3 + $0xf0] ss:$8 sps:$4 sm:$0xff]  }
  0x1f   : > { %464 = vmatprep.subr.bf16.mxu0 %v1336_v17  ;;  %v1383_v60 = vld [vmem:[%s1798_s3 + $0xe4] ss:$8 sps:$4 sm:$0xff]   ;;  %v1381_v61 = vld [vmem:[%s1798_s3 + $0xe0] ss:$8 sps:$4 sm:$0xff]   ;;  %v1389_v62 = vld [vmem:[%s1798_s3 + $0xd4] ss:$8 sps:$4 sm:$0xff]  }
  0x20   : > { %v1387_v63 = vld [vmem:[%s1798_s3 + $0xd0] ss:$8 sps:$4 sm:$0xff]   ;;  %v1395_v0 = vld [vmem:[%s1798_s3 + $0xc4] ss:$8 sps:$4 sm:$0xff]   ;;  %v1401_v2 = vld [vmem:[%s1798_s3 + $0xb4] ss:$8 sps:$4 sm:$0xff]  }
  0x21   : > { %1296 = vmatpush3.bf16.msra.mxu1 %v1338_v18  ;;  %v1399_v3 = vld [vmem:[%s1798_s3 + $0xb0] ss:$8 sps:$4 sm:$0xff]   ;;  %v1407_v4 = vld [vmem:[%s1798_s3 + $0xa4] ss:$8 sps:$4 sm:$0xff]   ;;  %v1413_v6 = vld [vmem:[%s1798_s3 + $0x94] ss:$8 sps:$4 sm:$0xff]  }
  0x22   : > { %465 = vmatpush1.bf16.msra.mxu0 %v1339_v19  ;;  %1297 = vmatprep.subr.bf16.mxu1 %v1444_v1  ;;  %v1416_v7 = vld [vmem:[%s1798_s3 + $0x104] ss:$8 sps:$4 sm:$0xff]   ;;  %v1411_v8 = vld [vmem:[%s1798_s3 + $0x90] ss:$8 sps:$4 sm:$0xff]   ;;  %v1414_v9 = vld [vmem:[%s1798_s3 + $0x100] ss:$8 sps:$4 sm:$0xff]  }
  0x23   : > { %466 = vmatprep.subr.bf16.mxu0 %v1340_v20  ;;  %v1419_v10 = vld [vmem:[%s1798_s3 + $0x84] ss:$8 sps:$4 sm:$0xff]   ;;  %v1417_v11 = vld [vmem:[%s1798_s3 + $0x80] ss:$8 sps:$4 sm:$0xff]   ;;  %v1420_v12 = vld [vmem:[%s1800_s5 + $0x78] sm:$0xff]   ;;  %v1728_v14 = vshrl.u32 %v311_v13, 7 }
  0x24   : > { %v309_v16 = vld [vmem:[%s1797_s2] sm:$0x7] }
  0x25   : > { %1298 = vmatpush3.bf16.msra.mxu1 %v1342_v21  ;;  %v321_v15 = vsub.s32 2, %v1728_v14  ;;  %v313_v17 = vsub.s32 0, %v1728_v14  ;;  %v317_v18 = vsub.s32 1, %v1728_v14 }
  0x26   : > { %467 = vmatpush1.bf16.msra.mxu0 %v1343_v22  ;;  %1299 = vmatprep.subr.bf16.mxu1 %v1444_v1  ;;  %v1393_v1 = vld [vmem:[%s1798_s3 + $0xc0] ss:$8 sps:$4 sm:$0xff]  }
  0x27   : > { %468 = vmatprep.subr.bf16.mxu0 %v1344_v23  ;;  %v322_v19 = vrot.slane %v309_v16, %v321_v15  ;;  %v314_v20 = vrot.slane %v309_v16, %v313_v17  ;;  %v318_v22 = vrot.slane %v309_v16, %v317_v18 }
  0x29   : > { %1300 = vmatpush3.bf16.msra.mxu1 %v1346_v24 }
  0x2a   : > { %469 = vmatpush1.bf16.msra.mxu0 %v1347_v26  ;;  %882 = vmatprep.subr.bf16.mxu1 %v1374_v29 }
  0x2b   : > { %841 = vmatprep.subr.bf16.mxu0 %v1350_v27 }
  0x2c   : > { %1302 = vmatmul.mubr.bf16.vlgmr.msra.gmra.mxu1 %v276_v28 }
  0x2d   : > { %487 = vmatmul.mubr.bf16.vlgmr.msra.gmra.mxu0 %v276_v28  ;;  %883 = vmatpush1.bf16.msra.mxu1 %v1372_v30 }
  0x2e   : > { %842 = vmatpush1.bf16.msra.mxu0 %v1348_v31  ;;  %884 = vmatprep.subr.bf16.mxu1 %v1380_v33  ;;  %v1421_v31 = vld [vmem:[%s1800_s5 + $0x38] sm:$0xff]  }
  0x2f   : > { %843 = vmatprep.subr.bf16.mxu0 %v1353_v32  ;;  %914 = vmatprep.mubr.bf16.mxu1 %v1446_v5  ;;  %v1405_v5 = vld [vmem:[%s1798_s3 + $0xa0] ss:$8 sps:$4 sm:$0xff]  }
  0x31   : > { %885 = vmatpush1.bf16.msra.mxu1 %v1378_v35  ;;  %v1422_v35 = vld [vmem:[%s1800_s5 + $0x70] sm:$0xff]  }
  0x32   : > { %844 = vmatpush1.bf16.msra.mxu0 %v1351_v34  ;;  %886 = vmatprep.subr.bf16.mxu1 %v1386_v36 }
  0x33   : > { %845 = vmatprep.subr.bf16.mxu0 %v1356_v37 }
  0x35   : > { %887 = vmatpush1.bf16.msra.mxu1 %v1384_v39 }
  0x36   : > { %846 = vmatpush1.bf16.msra.mxu0 %v1354_v38  ;;  %888 = vmatprep.subr.bf16.mxu1 %v1392_v40  ;;  %v1423_v40 = vld [vmem:[%s1800_s5 + $0x30] sm:$0xff]  }
  0x37   : > { %847 = vmatprep.subr.bf16.mxu0 %v1359_v41 }
  0x39   : > { %889 = vmatpush1.bf16.msra.mxu1 %v1390_v43  ;;  %v1425_v43 = vld [vmem:[%s1800_s5 + $0x28] sm:$0xff]  }
  0x3a   : > { %848 = vmatpush1.bf16.msra.mxu0 %v1357_v42  ;;  %890 = vmatprep.subr.bf16.mxu1 %v1398_v44  ;;  %v1424_v42 = vld [vmem:[%s1800_s5 + $0x68] sm:$0xff]   ;;  %v1426_v44 = vld [vmem:[%s1800_s5 + $0x60] sm:$0xff]  }
  0x3b   : > { %849 = vmatprep.subr.bf16.mxu0 %v1362_v45  ;;  %v1427_v45 = vld [vmem:[%s1800_s5 + $0x20] sm:$0xff]  }
  0x3d   : > { %891 = vmatpush1.bf16.msra.mxu1 %v1396_v47  ;;  %v1429_v47 = vld [vmem:[%s1800_s5 + $0x18] sm:$0xff]  }
  0x3e   : > { %850 = vmatpush1.bf16.msra.mxu0 %v1360_v46  ;;  %892 = vmatprep.subr.bf16.mxu1 %v1404_v49  ;;  %v1428_v46 = vld [vmem:[%s1800_s5 + $0x58] sm:$0xff]   ;;  %v1431_v49 = vld [vmem:[%s1800_s5 + $0x10] sm:$0xff]  }
  0x3f   : > { %851 = vmatprep.subr.bf16.mxu0 %v1365_v48  ;;  %v1430_v48 = vld [vmem:[%s1800_s5 + $0x50] sm:$0xff]  }
  0x41   : > { %893 = vmatpush1.bf16.msra.mxu1 %v1402_v50  ;;  %v1432_v50 = vld [vmem:[%s1800_s5 + $0x48] sm:$0xff]  }
  0x42   : > { %852 = vmatpush1.bf16.msra.mxu0 %v1363_v51  ;;  %894 = vmatprep.subr.bf16.mxu1 %v1410_v52  ;;  %v1433_v51 = vld [vmem:[%s1800_s5 + $0x8] sm:$0xff]   ;;  %v1434_v52 = vld [vmem:[%s1800_s5 + $0x40] sm:$0xff]  }
  0x43   : > { %853 = vmatprep.subr.bf16.mxu0 %v1368_v53  ;;  %v1435_v53 = vld [vmem:[%s1800_s5] sm:$0xff]  }
  0x45   : > { %895 = vmatpush1.bf16.msra.mxu1 %v1408_v54  ;;  %v589_v54 = vld [vmem:[%s1799_s4] sm:$0x3] }
  0x46   : > { %854 = vmatpush1.bf16.msra.mxu0 %v1366_v55  ;;  %896 = vmatprep.subr.bf16.mxu1 %v1416_v7 }
  0x47   : > { %855 = vmatprep.subr.bf16.mxu0 %v1371_v56  ;;  %v594_v56 = vrot.slane %v589_v54, %v313_v17 }
  0x49   : > { %897 = vmatpush1.bf16.msra.mxu1 %v1414_v9 }
  0x4a   : > { %856 = vmatpush1.bf16.msra.mxu0 %v1369_v57  ;;  %1263 = vmatprep.subr.bf16.mxu1 %v1420_v12 }
  0x4b   : > { %857 = vmatprep.subr.bf16.mxu0 %v1377_v58  ;;  %v598_v58 = vrot.slane %v589_v54, %v317_v18 }
  0x4e   : > { %858 = vmatpush2.bf16.msra.mxu0 %v1375_v59 }
  0x4f   : > { %859 = vmatprep.subr.bf16.mxu0 %v1383_v60 }
  0x52   : > { %860 = vmatpush2.bf16.msra.mxu0 %v1381_v61 }
  0x53   : > { %861 = vmatprep.subr.bf16.mxu0 %v1389_v62 }
  0x56   : > { %862 = vmatpush2.bf16.msra.mxu0 %v1387_v63 }
  0x57   : > { %863 = vmatprep.subr.bf16.mxu0 %v1395_v0 }
  0x5a   : > { %864 = vmatpush2.bf16.msra.mxu0 %v1393_v1 }
  0x5b   : > { %865 = vmatprep.subr.bf16.mxu0 %v1401_v2 }
  0x5e   : > { %866 = vmatpush2.bf16.msra.mxu0 %v1399_v3 }
  0x5f   : > { %867 = vmatprep.subr.bf16.mxu0 %v1407_v4 }
  0x62   : > { %868 = vmatpush2.bf16.msra.mxu0 %v1405_v5 }
  0x63   : > { %869 = vmatprep.subr.bf16.mxu0 %v1413_v6 }
  0x66   : > { %870 = vmatpush2.bf16.msra.mxu0 %v1411_v8 }
  0x67   : > { %871 = vmatprep.subr.bf16.mxu0 %v1419_v10  ;;  %v1235_v10 = vld [vmem:[%s1801_s6] ss:$0 sm:$0xff] }
  0x6a   : > { %872 = vmatpush2.bf16.msra.mxu0 %v1417_v11 }
  0xec   : > { %v529_v21 = vpop.f32.mrf.mxu1 }
  0xed   : > { %v530_v23 = vadd.f32 %v529_v21, %v322_v19  ;;  %v488_v24 = vpop.f32.mrf.mxu0 }
  0xee   : > { %v489_v25 = vadd.f32 %v488_v24, %v314_v20  ;;  %v1303_v26 = vpop.f32.mrf.mxu1 }
  0xef   : > { %v537_v27 = vmax.f32 %v530_v23, 0.0  ;;  %v490_v28 = vpop.f32.mrf.mxu0 }
  0xf0   : > { %v491_v29 = vadd.f32 %v490_v28, %v318_v22  ;;  %v532_v30 = vpop.f32.mrf.mxu1  ;;  %v535_v33 = vmax.f32 %v489_v25, 0.0 }
  0xf1   : > { %v540_v32 = vpack.c.bf16 %v537_v27, %v537_v27  ;;  %v492_v34 = vpop.f32.mrf.mxu0 }
  0xf2   : > { %v536_v36 = vmax.f32 %v491_v29, 0.0  ;;  %v1304_v37 = vpop.f32.mrf.mxu1  ;;  %v538_v41 = vpack.c.bf16 %v535_v33, %v535_v33 }
  0xf3   : > { %v493_v38 = vpop.f32.mrf.mxu0  ;;  %915 = vmatmul.mubr.bf16.vlgmr.msra.gmra.mxu1 %v540_v32 }
  0xf4   : > { %v539_v39 = vpack.c.bf16 %v536_v36, %v536_v36  ;;  %1264 = vmatpush3.bf16.msra.mxu1 %v1421_v31 }
  0xf5   : > { %1265 = vmatprep.subr.bf16.mxu1 %v1422_v35 }
  0xf6   : > { %873 = vmatprep.mubr.bf16.mxu0 %v539_v39 }
  0xf7   : > { %874 = vmatmul.mubr.bf16.vlgmr.msra.gmra.mxu0 %v538_v41 }
  0xf8   : > { %1266 = vmatpush3.bf16.msra.mxu1 %v1423_v40 }
  0xf9   : > { %1267 = vmatprep.subr.bf16.mxu1 %v1424_v42 }
  0xfc   : > { %1268 = vmatpush3.bf16.msra.mxu1 %v1425_v43 }
  0xfd   : > { %1269 = vmatprep.subr.bf16.mxu1 %v1426_v44 }
 0x100   : > { %1270 = vmatpush3.bf16.msra.mxu1 %v1427_v45 }
 0x101   : > { %1271 = vmatprep.subr.bf16.mxu1 %v1428_v46 }
 0x104   : > { %1272 = vmatpush3.bf16.msra.mxu1 %v1429_v47 }
 0x105   : > { %1273 = vmatprep.subr.bf16.mxu1 %v1430_v48 }
 0x108   : > { %1274 = vmatpush3.bf16.msra.mxu1 %v1431_v49 }
 0x109   : > { %1275 = vmatprep.subr.bf16.mxu1 %v1432_v50 }
 0x10c   : > { %1276 = vmatpush3.bf16.msra.mxu1 %v1433_v51 }
 0x10d   : > { %1277 = vmatprep.subr.bf16.mxu1 %v1434_v52 }
 0x110   : > { %1278 = vmatpush3.bf16.msra.mxu1 %v1435_v53 }
 0x1b3   : > { %v916_v55 = vpop.f32.mrf.mxu1 }
 0x1b5   : > { %v918_v57 = vpop.f32.mrf.mxu1 }
 0x1b7   : > { %v875_v59 = vpop.f32.mrf.mxu0  ;;  %v920_v60 = vpop.f32.mrf.mxu1 }
 0x1b8   : > { %v876_v61 = vadd.f32 %v875_v59, %v594_v56 }
 0x1b9   : > { %v877_v62 = vpop.f32.mrf.mxu0  ;;  %v921_v63 = vpop.f32.mrf.mxu1 }
 0x1ba   : > { %v917_v0 = vadd.f32 %v916_v55, %v876_v61  ;;  %v878_v1 = vadd.f32 %v877_v62, %v598_v58 }
 0x1bb   : > { %v879_v2 = vpop.f32.mrf.mxu0 }
 0x1bc   : > { %v919_v3 = vadd.f32 %v918_v57, %v878_v1  ;;  %v923_v4 = vmax.f32 %v917_v0, 0.0 }
 0x1bd   : > { %v880_v5 = vpop.f32.mrf.mxu0 }
 0x1be   : > { %v924_v6 = vmax.f32 %v919_v3, 0.0  ;;  %v925_v8 = vpack.c.bf16 %v923_v4, %v923_v4 }
 0x1c0   : > { %v926_v7 = vpack.c.bf16 %v924_v6, %v924_v6 }
 0x1c2   : > { %1094 = vmatprep.mubr.bf16.mxu1 %v926_v7 }
 0x1c3   : > { %1095 = vmatmul.mubr.bf16.vlgmr.msra.gmra.mxu1 %v925_v8 }
 0x283   : > { %v1279_v9 = vpop.f32.mrf.mxu1 }
 0x285   : > { %v1280_v11 = vpop.f32.mrf.mxu1 }
 0x286   : > { %v1281_v12 = vadd.f32 %v1280_v11, %v1279_v9 }
 0x287   : > { %v1282_v13 = vpop.f32.mrf.mxu1 }
 0x288   : > { %v1097_v14 = vadd.f32 %v1281_v12, %v1235_v10 }
 0x289   : > { %v1283_v15 = vpop.f32.mrf.mxu1 }
 0x28a   : > { %1102 = vst [vmem:[%s273_s9] sm:$0xff] %v1097_v14 }
 0x28b PF: > { %s17_s24 = sadd.s32 1, %s1442_s24  }
 0x28c   : > { %p14_p4 = scmp.ge.s32.totalorder %s17_s24, 5  }
 0x28e   :  { %16 = sbr.rel (!%p14_p4) target bundleno = 1 (0x1), region = 78 }

</bundles_post_ra>
